<compile_context>
chip_gen: v6e
topology: v6e:2x2x1
jax: 0.10.0
libtpu: 0.0.40
codegen_flags: <defaults>
</compile_context>

<pallas_src>
import math

import jax
import jax.numpy as jnp
from jax.experimental import pallas as pl
from jax.experimental.pallas import tpu as pltpu

NUM_HEADS = 4


def _cross_attention_kernel(qin_ref, cond_ref, wq_ref, wkv_ref, bvec_ref, cvec_ref, out_ref):
    # qin_ref : (B, N, C)  f32  embedding_embedding (residual + matmul input)
    # cond_ref: (B, N, C)  f32  condition_embedding (residual + matmul input)
    # wq_ref  : (C, C)     bf16 Wq^T
    # wkv_ref : (C, 2C)    bf16 [Wk^T | Wv^T]
    # bvec_ref: (4, B, 3C) f32  per-BATCH vectors (broadcast over N in-kernel):
    #             [proj offsets | rprelu move1 | rprelu move2 + move*2 |
    #              [ctx_m1 | ctx_m2 | moveq2+movek2+movev2]]
    # cvec_ref: (4, 3C)    f32  per-channel params:
    #             [gamma_qkv, beta_qkv, alpha_qkv, [gamma_ctx|beta_ctx|alpha_ctx]]
    # out_ref : (B, N, C)  f32
    f32 = jnp.float32
    bf16 = jnp.bfloat16
    B, N, C = qin_ref.shape
    H = NUM_HEADS
    Dh = C // H
    BN = B * N
    eps = 1e-5

    qin = qin_ref[...]
    cond = cond_ref[...]
    bvec = bvec_ref[...]                       # (4, B, 3C)
    cvec = cvec_ref[...]                       # (4, 3C)

    def per_batch(i):                          # (B, 1, 3C) -> broadcasts over N
        return bvec[i][:, None, :]

    def per_chan(i):                           # (1, 1, 3C)
        return cvec[i:i + 1, :][:, None, :]

    off_all = per_batch(0)                     # folded (move1 @ W^T + bias)
    m1_all = per_batch(1)                      # rprelu move1   [q | k | v]
    m2_all = per_batch(2)                      # rprelu move2 + move*2 (folded)
    misc = per_batch(3)                        # [ctx_m1 | ctx_m2 | sum(move*2)]

    gamma_all = per_chan(0)                    # BN gamma       [q | k | v]
    beta_all = per_chan(1)
    alpha_all = per_chan(2)                    # PReLU slopes   [q | k | v]
    ctx_par = per_chan(3)                      # [gamma_ctx | beta_ctx | alpha_ctx]

    # ---- Q / KV projections: two MXU matmuls, bf16 operands, f32 accumulation ----
    qin_b = qin.reshape(BN, C).astype(bf16)
    cond_b = cond.reshape(BN, C).astype(bf16)
    proj_q = (jnp.dot(qin_b, wq_ref[...], preferred_element_type=f32)
              .reshape(B, N, C) + off_all[..., :C])
    proj_kv = (jnp.dot(cond_b, wkv_ref[...], preferred_element_type=f32)
               .reshape(B, N, 2 * C) + off_all[..., C:])

    # ---- BatchNormT (training-mode batch stats over B*N rows), one-pass stats ----
    inv_bn = 1.0 / BN

    def bn_rows(x, gamma, beta):
        s = jnp.sum(jnp.sum(x, axis=0, keepdims=True), axis=1, keepdims=True) * inv_bn
        s2 = jnp.sum(jnp.sum(x * x, axis=0, keepdims=True), axis=1, keepdims=True) * inv_bn
        var = s2 - s * s                       # biased variance (matches F.batch_norm)
        return (x - s) * jax.lax.rsqrt(var + eps) * gamma + beta

    mixed_q = bn_rows(proj_q, gamma_all[..., :C], beta_all[..., :C]) + qin
    cond2x = jnp.concatenate([cond, cond], axis=-1)          # in-register duplicate
    mixed_kv = bn_rows(proj_kv, gamma_all[..., C:], beta_all[..., C:]) + cond2x

    # ---- fused RPReLU (+ folded move*2) -> query / [key | value] ----------------
    t_q = mixed_q + m1_all[..., :C]
    q2 = jnp.where(t_q > 0, t_q, alpha_all[..., :C] * t_q) + m2_all[..., :C]
    t_kv = mixed_kv + m1_all[..., C:]
    kv2 = jnp.where(t_kv > 0, t_kv, alpha_all[..., C:] * t_kv) + m2_all[..., C:]
    k2 = kv2[..., :C]
    v2 = kv2[..., C:]

    # residual sum mixed_q + mixed_k + mixed_v (recovered from the folded move*2)
    res_sum = q2 + k2 + v2 - misc[..., 2 * C:]

    # ---- multi-head attention: heads stacked on the leading axis, ONE softmax,
    # one batched score matmul and one batched context matmul (bf16 on the MXU) ----
    inv_sqrt_dh = 1.0 / math.sqrt(Dh)

    def split_heads(x):                        # (B, N, C) -> (H*B, N, Dh), head-major
        return jnp.concatenate(
            [x[..., h * Dh:(h + 1) * Dh] for h in range(H)], axis=0).astype(bf16)

    qh = split_heads(q2)
    kh = split_heads(k2)
    vh = split_heads(v2)
    scores = jnp.einsum('bnd,bmd->bnm', qh, kh,
                        preferred_element_type=f32) * inv_sqrt_dh
    scores = scores - jnp.max(scores, axis=-1, keepdims=True)
    p = jnp.exp(scores)
    probs = p * pl.reciprocal(jnp.sum(p, axis=-1, keepdims=True), approx=True)
    ctx_h = jnp.einsum('bnm,bmd->bnd', probs.astype(bf16), vh,
                       preferred_element_type=f32)           # (H*B, N, Dh)
    ctx = jnp.concatenate([ctx_h[h * B:(h + 1) * B] for h in range(H)], axis=-1)

    # ---- context BatchNormT + residual sum + final RPReLU ------------------------
    ctx_bn = bn_rows(ctx, ctx_par[..., :C], ctx_par[..., C:2 * C])
    pre = ctx_bn + res_sum + misc[..., :C]
    out = jnp.where(pre > 0, pre, ctx_par[..., 2 * C:] * pre) + misc[..., C:2 * C]
    out_ref[...] = out.astype(out_ref.dtype)


_MOVE_NAMES = ['moveq1', 'movek1', 'movev1',
               'rpq1_m1', 'rpq1_m2', 'rpk1_m1', 'rpk1_m2', 'rpv1_m1', 'rpv1_m2',
               'moveq2', 'movek2', 'movev2', 'rpctx_m1', 'rpctx_m2']


def init_params(key, C, emb_chn):
    n_lin = len(_MOVE_NAMES) + 3
    ks = jax.random.split(key, n_lin)

    def lin(k, out_dim, in_dim, scale):
        kw, kb = jax.random.split(k)
        w = jax.random.normal(kw, (out_dim, in_dim), jnp.float32) * scale
        b = jax.random.normal(kb, (out_dim,), jnp.float32) * scale
        return w, b

    p = {}
    for i, name in enumerate(_MOVE_NAMES):
        # nn.Linear(emb_chn, embedding_dim); zero_module() in PyTorch (random here)
        p[name] = lin(ks[i], C, emb_chn, scale=0.05)
    p['query1'] = lin(ks[len(_MOVE_NAMES) + 0], C, C, scale=0.1)
    p['key1'] = lin(ks[len(_MOVE_NAMES) + 1], C, C, scale=0.1)
    p['value1'] = lin(ks[len(_MOVE_NAMES) + 2], C, C, scale=0.1)
    # BatchNorm1d defaults: weight=1, bias=0 ; PReLU default slope 0.25
    p['bn_gamma'] = jnp.ones((4, C), jnp.float32)    # rows: [q, k, v, ctx]
    p['bn_beta'] = jnp.zeros((4, C), jnp.float32)
    p['prelu_alpha'] = jnp.full((4, C), 0.25, jnp.float32)
    return p


def prepare_static(params):
    """Input-independent packing (weights / per-channel params). Compute ONCE."""
    wq, _ = params['query1']
    wk, _ = params['key1']
    wv, _ = params['value1']
    g, be, al = params['bn_gamma'], params['bn_beta'], params['prelu_alpha']
    cvec = jnp.stack([
        jnp.concatenate([g[0], g[1], g[2]]),
        jnp.concatenate([be[0], be[1], be[2]]),
        jnp.concatenate([al[0], al[1], al[2]]),
        jnp.concatenate([g[3], be[3], al[3]]),
    ], axis=0).astype(jnp.float32)                                   # (4, 3C)
    return {
        'wq_t': wq.T.astype(jnp.bfloat16),                           # (C, C)
        'wkv_t': jnp.concatenate([wk.T, wv.T], axis=1).astype(jnp.bfloat16),  # (C, 2C)
        'cvec': cvec,
    }


def cross_attention_forward(condition_embedding, embedding_embedding, emb, params, static):
    B, N, C = condition_embedding.shape
    assert embedding_embedding.shape == (B, N, C)
    f32 = jnp.float32

    # tiny SiLU -> Linear(emb_chn, C) "move" projections on (B, emb_chn)
    silu = emb * jax.nn.sigmoid(emb)
    m = {}
    for name in _MOVE_NAMES:
        w, b = params[name]
        m[name] = silu @ w.T + b                                     # (B, C)

    wq, bq = params['query1']
    wk, bk = params['key1']
    wv, bv = params['value1']
    # fold move1 offsets + biases through the projections: y = x@W^T + (m@W^T + b)
    off_q = m['moveq1'] @ wq.T + bq
    off_k = m['movek1'] @ wk.T + bk
    off_v = m['movev1'] @ wv.T + bv

    off_all = jnp.concatenate([off_q, off_k, off_v], axis=-1)        # (B, 3C)
    m1_all = jnp.concatenate([m['rpq1_m1'], m['rpk1_m1'], m['rpv1_m1']], axis=-1)
    m2_all = jnp.concatenate([m['rpq1_m2'] + m['moveq2'],
                              m['rpk1_m2'] + m['movek2'],
                              m['rpv1_m2'] + m['movev2']], axis=-1)
    sum_m2b = m['moveq2'] + m['movek2'] + m['movev2']
    misc = jnp.concatenate([m['rpctx_m1'], m['rpctx_m2'], sum_m2b], axis=-1)

    # per-BATCH vectors only; broadcast over N happens inside the kernel (no repeat)
    bvec = jnp.stack([off_all, m1_all, m2_all, misc], axis=0).astype(f32)  # (4, B, 3C)

    qin = embedding_embedding.astype(f32)
    cond = condition_embedding.astype(f32)

    out = pl.pallas_call(
        _cross_attention_kernel,
        out_shape=jax.ShapeDtypeStruct((B, N, C), f32),
        grid=(1,),
        in_specs=[
            pl.BlockSpec((B, N, C), lambda i: (0, 0, 0)),        # embedding_embedding
            pl.BlockSpec((B, N, C), lambda i: (0, 0, 0)),        # condition_embedding
            pl.BlockSpec((C, C), lambda i: (0, 0)),              # Wq^T (bf16)
            pl.BlockSpec((C, 2 * C), lambda i: (0, 0)),          # [Wk^T | Wv^T] (bf16)
            pl.BlockSpec((4, B, 3 * C), lambda i: (0, 0, 0)),    # per-batch vectors
            pl.BlockSpec((4, 3 * C), lambda i: (0, 0)),          # per-channel params
        ],
        out_specs=pl.BlockSpec((B, N, C), lambda i: (0, 0, 0)),
        compiler_params=pltpu.CompilerParams(
            dimension_semantics=("arbitrary",),
            vmem_limit_bytes=64 * 1024 * 1024,
        ),
    )(qin, cond, static['wq_t'], static['wkv_t'], bvec, static['cvec'])
    return out


def _reference_forward(cond_e, emb_e, emb, params):
    """Straight-line pure-JAX reference following the PyTorch module (f32)."""
    silu = emb * jax.nn.sigmoid(emb)

    def move(name):
        w, b = params[name]
        return (silu @ w.T + b)[:, None, :]                      # (B, 1, C)

    def lin(name, x):
        w, b = params[name]
        return x @ w.T + b

    def bn(x, idx):
        mu = jnp.mean(x, axis=(0, 1), keepdims=True)
        var = jnp.var(x, axis=(0, 1), keepdims=True)
        g = params['bn_gamma'][idx][None, None, :]
        b = params['bn_beta'][idx][None, None, :]
        return (x - mu) / jnp.sqrt(var + 1e-5) * g + b

    def prelu(x, idx):
        a = params['prelu_alpha'][idx][None, None, :]
        return jnp.where(x > 0, x, a * x)

    mixed_q = bn(lin('query1', emb_e + move('moveq1')), 0) + emb_e
    mixed_k = bn(lin('key1', cond_e + move('movek1')), 1) + cond_e
    mixed_v = bn(lin('value1', cond_e + move('movev1')), 2) + cond_e
    mixed_q = prelu(mixed_q + move('rpq1_m1'), 0) + move('rpq1_m2')
    mixed_k = prelu(mixed_k + move('rpk1_m1'), 1) + move('rpk1_m2')
    mixed_v = prelu(mixed_v + move('rpv1_m1'), 2) + move('rpv1_m2')
    q = mixed_q + move('moveq2')
    k = mixed_k + move('movek2')
    v = mixed_v + move('movev2')

    B, N, C = q.shape
    H, Dh = NUM_HEADS, C // NUM_HEADS

    def heads(x):
        return x.reshape(B, N, H, Dh).transpose(0, 2, 1, 3)      # (B, H, N, Dh)

    s = jnp.einsum('bhnd,bhmd->bhnm', heads(q), heads(k)) / math.sqrt(Dh)
    p = jax.nn.softmax(s, axis=-1)
    ctx = jnp.einsum('bhnm,bhmd->bhnd', p, heads(v)).transpose(0, 2, 1, 3).reshape(B, N, C)
    ctx = bn(ctx, 3) + mixed_q + mixed_k + mixed_v
    return prelu(ctx + move('rpctx_m1'), 3) + move('rpctx_m2')


if __name__ == "__main__":
    B, N, C, emb_chn = 2, 16, 32, 8          # embedding_dim=32, 4 heads of size 8
    key = jax.random.PRNGKey(0)
    k1, k2, k3, kp = jax.random.split(key, 4)
    condition_embedding = jax.random.normal(k1, (B, N, C), jnp.float32)
    embedding_embedding = jax.random.normal(k2, (B, N, C), jnp.float32)
    emb = jax.random.normal(k3, (B, emb_chn), jnp.float32)

    params = init_params(kp, C, emb_chn)
    static = prepare_static(params)          # weight packing hoisted out of forward

    fwd = jax.jit(cross_attention_forward)
    out = fwd(condition_embedding, embedding_embedding, emb, params, static)
    jax.block_until_ready(out)

    assert out.shape == (B, N, C) and out.dtype == jnp.float32
    assert bool(jnp.all(jnp.isfinite(out)))

    # validate the offset/move folding against a straight-line f32 reference
    # (kernel uses bf16 MXU operands + approx softmax reciprocal -> loose tolerance)
    ref = _reference_forward(condition_embedding, embedding_embedding, emb, params)
    max_err = float(jnp.max(jnp.abs(out - ref)))
    assert max_err < 0.25, f"kernel deviates from reference: max_err={max_err}"

    print("KERNEL_OK")
</pallas_src>

<mosaic_0001>
module attributes {stable_mosaic.version = 11 : i64} {
  func.func @_cross_attention_kernel(%arg0: i32, %arg1: memref<2x16x32xf32, #tpu.memory_space<vmem>>, %arg2: memref<2x16x32xf32, #tpu.memory_space<vmem>>, %arg3: memref<32x32xbf16, #tpu.memory_space<vmem>>, %arg4: memref<32x64xbf16, #tpu.memory_space<vmem>>, %arg5: memref<4x2x96xf32, #tpu.memory_space<vmem>>, %arg6: memref<4x96xf32, #tpu.memory_space<vmem>>, %arg7: memref<2x16x32xf32, #tpu.memory_space<vmem>>) attributes {dimension_semantics = [#tpu.dimension_semantics<arbitrary>], iteration_bounds = array<i64: 1>, scalar_prefetch = 0 : i64, scratch_operands = 0 : i64, tpu.core_type = #tpu.core_type<tc>, window_params = [{pipeline_mode = #tpu.pipeline_mode<synchronous>, transform_indices = @transform_0, window_bounds = array<i64: 2, 16, 32>}, {pipeline_mode = #tpu.pipeline_mode<synchronous>, transform_indices = @transform_1, window_bounds = array<i64: 2, 16, 32>}, {pipeline_mode = #tpu.pipeline_mode<synchronous>, transform_indices = @transform_2, window_bounds = array<i64: 32, 32>}, {pipeline_mode = #tpu.pipeline_mode<synchronous>, transform_indices = @transform_3, window_bounds = array<i64: 32, 64>}, {pipeline_mode = #tpu.pipeline_mode<synchronous>, transform_indices = @transform_4, window_bounds = array<i64: 4, 2, 96>}, {pipeline_mode = #tpu.pipeline_mode<synchronous>, transform_indices = @transform_5, window_bounds = array<i64: 4, 96>}, {pipeline_mode = #tpu.pipeline_mode<synchronous>, transform_indices = @transform_6, window_bounds = array<i64: 2, 16, 32>}]} {
    %c0 = arith.constant 0 : index
    %c0_0 = arith.constant 0 : index
    %c0_1 = arith.constant 0 : index
    %0 = vector.load %arg1[%c0, %c0_0, %c0_1] : memref<2x16x32xf32, #tpu.memory_space<vmem>>, vector<2x16x32xf32>
    %c0_2 = arith.constant 0 : index
    %c0_3 = arith.constant 0 : index
    %c0_4 = arith.constant 0 : index
    %1 = vector.load %arg2[%c0_2, %c0_3, %c0_4] : memref<2x16x32xf32, #tpu.memory_space<vmem>>, vector<2x16x32xf32>
    %c0_5 = arith.constant 0 : index
    %c0_6 = arith.constant 0 : index
    %c0_7 = arith.constant 0 : index
    %2 = vector.load %arg5[%c0_5, %c0_6, %c0_7] : memref<4x2x96xf32, #tpu.memory_space<vmem>>, vector<4x2x96xf32>
    %c0_8 = arith.constant 0 : index
    %c0_9 = arith.constant 0 : index
    %3 = vector.load %arg6[%c0_8, %c0_9] : memref<4x96xf32, #tpu.memory_space<vmem>>, vector<4x96xf32>
    %4 = vector.extract_strided_slice %2 {offsets = [0, 0, 0], sizes = [1, 2, 96], strides = [1, 1, 1]} : vector<4x2x96xf32> to vector<1x2x96xf32>
    %5 = vector.shape_cast %4 : vector<1x2x96xf32> to vector<2x96xf32>
    %6 = vector.shape_cast %5 : vector<2x96xf32> to vector<2x1x96xf32>
    %7 = vector.extract_strided_slice %2 {offsets = [1, 0, 0], sizes = [1, 2, 96], strides = [1, 1, 1]} : vector<4x2x96xf32> to vector<1x2x96xf32>
    %8 = vector.shape_cast %7 : vector<1x2x96xf32> to vector<2x96xf32>
    %9 = vector.shape_cast %8 : vector<2x96xf32> to vector<2x1x96xf32>
    %10 = vector.extract_strided_slice %2 {offsets = [2, 0, 0], sizes = [1, 2, 96], strides = [1, 1, 1]} : vector<4x2x96xf32> to vector<1x2x96xf32>
    %11 = vector.shape_cast %10 : vector<1x2x96xf32> to vector<2x96xf32>
    %12 = vector.shape_cast %11 : vector<2x96xf32> to vector<2x1x96xf32>
    %13 = vector.extract_strided_slice %2 {offsets = [3, 0, 0], sizes = [1, 2, 96], strides = [1, 1, 1]} : vector<4x2x96xf32> to vector<1x2x96xf32>
    %14 = vector.shape_cast %13 : vector<1x2x96xf32> to vector<2x96xf32>
    %15 = vector.shape_cast %14 : vector<2x96xf32> to vector<2x1x96xf32>
    %16 = vector.extract_strided_slice %3 {offsets = [0, 0], sizes = [1, 96], strides = [1, 1]} : vector<4x96xf32> to vector<1x96xf32>
    %17 = vector.shape_cast %16 : vector<1x96xf32> to vector<1x1x96xf32>
    %18 = vector.extract_strided_slice %3 {offsets = [1, 0], sizes = [1, 96], strides = [1, 1]} : vector<4x96xf32> to vector<1x96xf32>
    %19 = vector.shape_cast %18 : vector<1x96xf32> to vector<1x1x96xf32>
    %20 = vector.extract_strided_slice %3 {offsets = [2, 0], sizes = [1, 96], strides = [1, 1]} : vector<4x96xf32> to vector<1x96xf32>
    %21 = vector.shape_cast %20 : vector<1x96xf32> to vector<1x1x96xf32>
    %22 = vector.extract_strided_slice %3 {offsets = [3, 0], sizes = [1, 96], strides = [1, 1]} : vector<4x96xf32> to vector<1x96xf32>
    %23 = vector.shape_cast %22 : vector<1x96xf32> to vector<1x1x96xf32>
    %24 = vector.shape_cast %0 : vector<2x16x32xf32> to vector<32x32xf32>
    %25 = arith.truncf %24 : vector<32x32xf32> to vector<32x32xbf16>
    %26 = vector.shape_cast %1 : vector<2x16x32xf32> to vector<32x32xf32>
    %27 = arith.truncf %26 : vector<32x32xf32> to vector<32x32xbf16>
    %c0_10 = arith.constant 0 : index
    %c0_11 = arith.constant 0 : index
    %28 = vector.load %arg3[%c0_10, %c0_11] : memref<32x32xbf16, #tpu.memory_space<vmem>>, vector<32x32xbf16>
    %cst = arith.constant dense<0.000000e+00> : vector<32x32xf32>
    %29 = tpu.matmul %25, %28, %cst {dimension_numbers = #tpu.dot_dimension_numbers<[1], [0], [0], [1], [0, 0, 1, 1], [], []>} : vector<32x32xbf16>, vector<32x32xbf16>, vector<32x32xf32> -> vector<32x32xf32>
    %30 = vector.shape_cast %29 : vector<32x32xf32> to vector<2x16x32xf32>
    %31 = vector.extract_strided_slice %6 {offsets = [0, 0, 0], sizes = [2, 1, 32], strides = [1, 1, 1]} : vector<2x1x96xf32> to vector<2x1x32xf32>
    %32 = vector.broadcast %31 : vector<2x1x32xf32> to vector<2x16x32xf32>
    %33 = arith.addf %30, %32 : vector<2x16x32xf32>
    %c0_12 = arith.constant 0 : index
    %c0_13 = arith.constant 0 : index
    %34 = vector.load %arg4[%c0_12, %c0_13] : memref<32x64xbf16, #tpu.memory_space<vmem>>, vector<32x64xbf16>
    %cst_14 = arith.constant dense<0.000000e+00> : vector<32x64xf32>
    %35 = tpu.matmul %27, %34, %cst_14 {dimension_numbers = #tpu.dot_dimension_numbers<[1], [0], [0], [1], [0, 0, 1, 1], [], []>} : vector<32x32xbf16>, vector<32x64xbf16>, vector<32x64xf32> -> vector<32x64xf32>
    %36 = vector.shape_cast %35 : vector<32x64xf32> to vector<2x16x64xf32>
    %37 = vector.extract_strided_slice %6 {offsets = [0, 0, 32], sizes = [2, 1, 64], strides = [1, 1, 1]} : vector<2x1x96xf32> to vector<2x1x64xf32>
    %38 = vector.broadcast %37 : vector<2x1x64xf32> to vector<2x16x64xf32>
    %39 = arith.addf %36, %38 : vector<2x16x64xf32>
    %40 = vector.extract_strided_slice %17 {offsets = [0, 0, 0], sizes = [1, 1, 32], strides = [1, 1, 1]} : vector<1x1x96xf32> to vector<1x1x32xf32>
    %41 = vector.extract_strided_slice %19 {offsets = [0, 0, 0], sizes = [1, 1, 32], strides = [1, 1, 1]} : vector<1x1x96xf32> to vector<1x1x32xf32>
    %cst_15 = arith.constant dense<0.000000e+00> : vector<16x32xf32>
    %42 = vector.multi_reduction <add>, %33, %cst_15 [0] : vector<2x16x32xf32> to vector<16x32xf32>
    %43 = vector.shape_cast %42 : vector<16x32xf32> to vector<1x16x32xf32>
    %cst_16 = arith.constant dense<0.000000e+00> : vector<1x32xf32>
    %44 = vector.multi_reduction <add>, %43, %cst_16 [1] : vector<1x16x32xf32> to vector<1x32xf32>
    %45 = vector.shape_cast %44 : vector<1x32xf32> to vector<1x1x32xf32>
    %cst_17 = arith.constant 3.125000e-02 : f32
    %46 = vector.broadcast %cst_17 : f32 to vector<1x1x32xf32>
    %47 = arith.mulf %45, %46 : vector<1x1x32xf32>
    %48 = arith.mulf %33, %33 : vector<2x16x32xf32>
    %cst_18 = arith.constant dense<0.000000e+00> : vector<16x32xf32>
    %49 = vector.multi_reduction <add>, %48, %cst_18 [0] : vector<2x16x32xf32> to vector<16x32xf32>
    %50 = vector.shape_cast %49 : vector<16x32xf32> to vector<1x16x32xf32>
    %cst_19 = arith.constant dense<0.000000e+00> : vector<1x32xf32>
    %51 = vector.multi_reduction <add>, %50, %cst_19 [1] : vector<1x16x32xf32> to vector<1x32xf32>
    %52 = vector.shape_cast %51 : vector<1x32xf32> to vector<1x1x32xf32>
    %cst_20 = arith.constant 3.125000e-02 : f32
    %53 = vector.broadcast %cst_20 : f32 to vector<1x1x32xf32>
    %54 = arith.mulf %52, %53 : vector<1x1x32xf32>
    %55 = arith.mulf %47, %47 : vector<1x1x32xf32>
    %56 = arith.subf %54, %55 : vector<1x1x32xf32>
    %57 = vector.broadcast %47 : vector<1x1x32xf32> to vector<2x16x32xf32>
    %58 = arith.subf %33, %57 : vector<2x16x32xf32>
    %cst_21 = arith.constant 9.99999974E-6 : f32
    %59 = vector.broadcast %cst_21 : f32 to vector<1x1x32xf32>
    %60 = arith.addf %56, %59 : vector<1x1x32xf32>
    %61 = math.rsqrt %60 : vector<1x1x32xf32>
    %62 = vector.broadcast %61 : vector<1x1x32xf32> to vector<2x16x32xf32>
    %63 = arith.mulf %58, %62 : vector<2x16x32xf32>
    %64 = vector.broadcast %40 : vector<1x1x32xf32> to vector<2x16x32xf32>
    %65 = arith.mulf %63, %64 : vector<2x16x32xf32>
    %66 = vector.broadcast %41 : vector<1x1x32xf32> to vector<2x16x32xf32>
    %67 = arith.addf %65, %66 : vector<2x16x32xf32>
    %68 = arith.addf %67, %0 : vector<2x16x32xf32>
    %69 = tpu.concatenate %1, %1 in 2 : vector<2x16x32xf32>, vector<2x16x32xf32> -> vector<2x16x64xf32>
    %70 = vector.extract_strided_slice %17 {offsets = [0, 0, 32], sizes = [1, 1, 64], strides = [1, 1, 1]} : vector<1x1x96xf32> to vector<1x1x64xf32>
    %71 = vector.extract_strided_slice %19 {offsets = [0, 0, 32], sizes = [1, 1, 64], strides = [1, 1, 1]} : vector<1x1x96xf32> to vector<1x1x64xf32>
    %cst_22 = arith.constant dense<0.000000e+00> : vector<16x64xf32>
    %72 = vector.multi_reduction <add>, %39, %cst_22 [0] : vector<2x16x64xf32> to vector<16x64xf32>
    %73 = vector.shape_cast %72 : vector<16x64xf32> to vector<1x16x64xf32>
    %cst_23 = arith.constant dense<0.000000e+00> : vector<1x64xf32>
    %74 = vector.multi_reduction <add>, %73, %cst_23 [1] : vector<1x16x64xf32> to vector<1x64xf32>
    %75 = vector.shape_cast %74 : vector<1x64xf32> to vector<1x1x64xf32>
    %cst_24 = arith.constant 3.125000e-02 : f32
    %76 = vector.broadcast %cst_24 : f32 to vector<1x1x64xf32>
    %77 = arith.mulf %75, %76 : vector<1x1x64xf32>
    %78 = arith.mulf %39, %39 : vector<2x16x64xf32>
    %cst_25 = arith.constant dense<0.000000e+00> : vector<16x64xf32>
    %79 = vector.multi_reduction <add>, %78, %cst_25 [0] : vector<2x16x64xf32> to vector<16x64xf32>
    %80 = vector.shape_cast %79 : vector<16x64xf32> to vector<1x16x64xf32>
    %cst_26 = arith.constant dense<0.000000e+00> : vector<1x64xf32>
    %81 = vector.multi_reduction <add>, %80, %cst_26 [1] : vector<1x16x64xf32> to vector<1x64xf32>
    %82 = vector.shape_cast %81 : vector<1x64xf32> to vector<1x1x64xf32>
    %cst_27 = arith.constant 3.125000e-02 : f32
    %83 = vector.broadcast %cst_27 : f32 to vector<1x1x64xf32>
    %84 = arith.mulf %82, %83 : vector<1x1x64xf32>
    %85 = arith.mulf %77, %77 : vector<1x1x64xf32>
    %86 = arith.subf %84, %85 : vector<1x1x64xf32>
    %87 = vector.broadcast %77 : vector<1x1x64xf32> to vector<2x16x64xf32>
    %88 = arith.subf %39, %87 : vector<2x16x64xf32>
    %cst_28 = arith.constant 9.99999974E-6 : f32
    %89 = vector.broadcast %cst_28 : f32 to vector<1x1x64xf32>
    %90 = arith.addf %86, %89 : vector<1x1x64xf32>
    %91 = math.rsqrt %90 : vector<1x1x64xf32>
    %92 = vector.broadcast %91 : vector<1x1x64xf32> to vector<2x16x64xf32>
    %93 = arith.mulf %88, %92 : vector<2x16x64xf32>
    %94 = vector.broadcast %70 : vector<1x1x64xf32> to vector<2x16x64xf32>
    %95 = arith.mulf %93, %94 : vector<2x16x64xf32>
    %96 = vector.broadcast %71 : vector<1x1x64xf32> to vector<2x16x64xf32>
    %97 = arith.addf %95, %96 : vector<2x16x64xf32>
    %98 = arith.addf %97, %69 : vector<2x16x64xf32>
    %99 = vector.extract_strided_slice %9 {offsets = [0, 0, 0], sizes = [2, 1, 32], strides = [1, 1, 1]} : vector<2x1x96xf32> to vector<2x1x32xf32>
    %100 = vector.broadcast %99 : vector<2x1x32xf32> to vector<2x16x32xf32>
    %101 = arith.addf %68, %100 : vector<2x16x32xf32>
    %cst_29 = arith.constant 0.000000e+00 : f32
    %102 = vector.broadcast %cst_29 : f32 to vector<2x16x32xf32>
    %103 = arith.cmpf ogt, %101, %102 : vector<2x16x32xf32>
    %104 = vector.extract_strided_slice %21 {offsets = [0, 0, 0], sizes = [1, 1, 32], strides = [1, 1, 1]} : vector<1x1x96xf32> to vector<1x1x32xf32>
    %105 = vector.broadcast %104 : vector<1x1x32xf32> to vector<2x16x32xf32>
    %106 = arith.mulf %105, %101 : vector<2x16x32xf32>
    %107 = arith.select %103, %101, %106 : vector<2x16x32xi1>, vector<2x16x32xf32>
    %108 = vector.extract_strided_slice %12 {offsets = [0, 0, 0], sizes = [2, 1, 32], strides = [1, 1, 1]} : vector<2x1x96xf32> to vector<2x1x32xf32>
    %109 = vector.broadcast %108 : vector<2x1x32xf32> to vector<2x16x32xf32>
    %110 = arith.addf %107, %109 : vector<2x16x32xf32>
    %111 = vector.extract_strided_slice %9 {offsets = [0, 0, 32], sizes = [2, 1, 64], strides = [1, 1, 1]} : vector<2x1x96xf32> to vector<2x1x64xf32>
    %112 = vector.broadcast %111 : vector<2x1x64xf32> to vector<2x16x64xf32>
    %113 = arith.addf %98, %112 : vector<2x16x64xf32>
    %cst_30 = arith.constant 0.000000e+00 : f32
    %114 = vector.broadcast %cst_30 : f32 to vector<2x16x64xf32>
    %115 = arith.cmpf ogt, %113, %114 : vector<2x16x64xf32>
    %116 = vector.extract_strided_slice %21 {offsets = [0, 0, 32], sizes = [1, 1, 64], strides = [1, 1, 1]} : vector<1x1x96xf32> to vector<1x1x64xf32>
    %117 = vector.broadcast %116 : vector<1x1x64xf32> to vector<2x16x64xf32>
    %118 = arith.mulf %117, %113 : vector<2x16x64xf32>
    %119 = arith.select %115, %113, %118 : vector<2x16x64xi1>, vector<2x16x64xf32>
    %120 = vector.extract_strided_slice %12 {offsets = [0, 0, 32], sizes = [2, 1, 64], strides = [1, 1, 1]} : vector<2x1x96xf32> to vector<2x1x64xf32>
    %121 = vector.broadcast %120 : vector<2x1x64xf32> to vector<2x16x64xf32>
    %122 = arith.addf %119, %121 : vector<2x16x64xf32>
    %123 = vector.extract_strided_slice %122 {offsets = [0, 0, 0], sizes = [2, 16, 32], strides = [1, 1, 1]} : vector<2x16x64xf32> to vector<2x16x32xf32>
    %124 = vector.extract_strided_slice %122 {offsets = [0, 0, 32], sizes = [2, 16, 32], strides = [1, 1, 1]} : vector<2x16x64xf32> to vector<2x16x32xf32>
    %125 = arith.addf %110, %123 : vector<2x16x32xf32>
    %126 = arith.addf %125, %124 : vector<2x16x32xf32>
    %127 = vector.extract_strided_slice %15 {offsets = [0, 0, 64], sizes = [2, 1, 32], strides = [1, 1, 1]} : vector<2x1x96xf32> to vector<2x1x32xf32>
    %128 = vector.broadcast %127 : vector<2x1x32xf32> to vector<2x16x32xf32>
    %129 = arith.subf %126, %128 : vector<2x16x32xf32>
    %130 = vector.extract_strided_slice %110 {offsets = [0, 0, 0], sizes = [2, 16, 8], strides = [1, 1, 1]} : vector<2x16x32xf32> to vector<2x16x8xf32>
    %131 = vector.extract_strided_slice %110 {offsets = [0, 0, 8], sizes = [2, 16, 8], strides = [1, 1, 1]} : vector<2x16x32xf32> to vector<2x16x8xf32>
    %132 = vector.extract_strided_slice %110 {offsets = [0, 0, 16], sizes = [2, 16, 8], strides = [1, 1, 1]} : vector<2x16x32xf32> to vector<2x16x8xf32>
    %133 = vector.extract_strided_slice %110 {offsets = [0, 0, 24], sizes = [2, 16, 8], strides = [1, 1, 1]} : vector<2x16x32xf32> to vector<2x16x8xf32>
    %134 = tpu.concatenate %130, %131, %132, %133 in 0 : vector<2x16x8xf32>, vector<2x16x8xf32>, vector<2x16x8xf32>, vector<2x16x8xf32> -> vector<8x16x8xf32>
    %135 = arith.truncf %134 : vector<8x16x8xf32> to vector<8x16x8xbf16>
    %136 = vector.extract_strided_slice %123 {offsets = [0, 0, 0], sizes = [2, 16, 8], strides = [1, 1, 1]} : vector<2x16x32xf32> to vector<2x16x8xf32>
    %137 = vector.extract_strided_slice %123 {offsets = [0, 0, 8], sizes = [2, 16, 8], strides = [1, 1, 1]} : vector<2x16x32xf32> to vector<2x16x8xf32>
    %138 = vector.extract_strided_slice %123 {offsets = [0, 0, 16], sizes = [2, 16, 8], strides = [1, 1, 1]} : vector<2x16x32xf32> to vector<2x16x8xf32>
    %139 = vector.extract_strided_slice %123 {offsets = [0, 0, 24], sizes = [2, 16, 8], strides = [1, 1, 1]} : vector<2x16x32xf32> to vector<2x16x8xf32>
    %140 = tpu.concatenate %136, %137, %138, %139 in 0 : vector<2x16x8xf32>, vector<2x16x8xf32>, vector<2x16x8xf32>, vector<2x16x8xf32> -> vector<8x16x8xf32>
    %141 = arith.truncf %140 : vector<8x16x8xf32> to vector<8x16x8xbf16>
    %142 = vector.extract_strided_slice %124 {offsets = [0, 0, 0], sizes = [2, 16, 8], strides = [1, 1, 1]} : vector<2x16x32xf32> to vector<2x16x8xf32>
    %143 = vector.extract_strided_slice %124 {offsets = [0, 0, 8], sizes = [2, 16, 8], strides = [1, 1, 1]} : vector<2x16x32xf32> to vector<2x16x8xf32>
    %144 = vector.extract_strided_slice %124 {offsets = [0, 0, 16], sizes = [2, 16, 8], strides = [1, 1, 1]} : vector<2x16x32xf32> to vector<2x16x8xf32>
    %145 = vector.extract_strided_slice %124 {offsets = [0, 0, 24], sizes = [2, 16, 8], strides = [1, 1, 1]} : vector<2x16x32xf32> to vector<2x16x8xf32>
    %146 = tpu.concatenate %142, %143, %144, %145 in 0 : vector<2x16x8xf32>, vector<2x16x8xf32>, vector<2x16x8xf32>, vector<2x16x8xf32> -> vector<8x16x8xf32>
    %147 = arith.truncf %146 : vector<8x16x8xf32> to vector<8x16x8xbf16>
    "tpu.trace_start"() <{level = 10 : i32, message = "bnd,bmd->bnm"}> : () -> ()
    %cst_31 = arith.constant dense<0.000000e+00> : vector<8x16x16xf32>
    %148 = tpu.matmul %135, %141, %cst_31 {dimension_numbers = #tpu.dot_dimension_numbers<[2], [2], [1], [1], [0, 0, 0, 1, 1, 1], [0], [0]>} : vector<8x16x8xbf16>, vector<8x16x8xbf16>, vector<8x16x16xf32> -> vector<8x16x16xf32>
    "tpu.trace_stop"() : () -> ()
    %cst_32 = arith.constant 0.353553385 : f32
    %149 = vector.broadcast %cst_32 : f32 to vector<8x16x16xf32>
    %150 = arith.mulf %148, %149 : vector<8x16x16xf32>
    %cst_33 = arith.constant dense<0xFF800000> : vector<8x16xf32>
    %151 = vector.multi_reduction <maximumf>, %150, %cst_33 [2] : vector<8x16x16xf32> to vector<8x16xf32>
    %152 = vector.shape_cast %151 : vector<8x16xf32> to vector<8x16x1xf32>
    %153 = vector.broadcast %152 : vector<8x16x1xf32> to vector<8x16x16xf32>
    %154 = arith.subf %150, %153 : vector<8x16x16xf32>
    %155 = math.exp %154 : vector<8x16x16xf32>
    %cst_34 = arith.constant dense<0.000000e+00> : vector<8x16xf32>
    %156 = vector.multi_reduction <add>, %155, %cst_34 [2] : vector<8x16x16xf32> to vector<8x16xf32>
    %157 = vector.shape_cast %156 : vector<8x16xf32> to vector<8x16x1xf32>
    %158 = tpu.reciprocal %157 {approx = true} : vector<8x16x1xf32> -> vector<8x16x1xf32>
    %159 = vector.broadcast %158 : vector<8x16x1xf32> to vector<8x16x16xf32>
    %160 = arith.mulf %155, %159 : vector<8x16x16xf32>
    %161 = arith.truncf %160 : vector<8x16x16xf32> to vector<8x16x16xbf16>
    "tpu.trace_start"() <{level = 10 : i32, message = "bnm,bmd->bnd"}> : () -> ()
    %cst_35 = arith.constant dense<0.000000e+00> : vector<8x16x8xf32>
    %162 = tpu.matmul %161, %147, %cst_35 {dimension_numbers = #tpu.dot_dimension_numbers<[2], [1], [1], [2], [0, 0, 0, 1, 1, 2], [0], [0]>} : vector<8x16x16xbf16>, vector<8x16x8xbf16>, vector<8x16x8xf32> -> vector<8x16x8xf32>
    "tpu.trace_stop"() : () -> ()
    %163 = vector.extract_strided_slice %162 {offsets = [0, 0, 0], sizes = [2, 16, 8], strides = [1, 1, 1]} : vector<8x16x8xf32> to vector<2x16x8xf32>
    %164 = vector.extract_strided_slice %162 {offsets = [2, 0, 0], sizes = [2, 16, 8], strides = [1, 1, 1]} : vector<8x16x8xf32> to vector<2x16x8xf32>
    %165 = vector.extract_strided_slice %162 {offsets = [4, 0, 0], sizes = [2, 16, 8], strides = [1, 1, 1]} : vector<8x16x8xf32> to vector<2x16x8xf32>
    %166 = vector.extract_strided_slice %162 {offsets = [6, 0, 0], sizes = [2, 16, 8], strides = [1, 1, 1]} : vector<8x16x8xf32> to vector<2x16x8xf32>
    %167 = tpu.concatenate %163, %164, %165, %166 in 2 : vector<2x16x8xf32>, vector<2x16x8xf32>, vector<2x16x8xf32>, vector<2x16x8xf32> -> vector<2x16x32xf32>
    %168 = vector.extract_strided_slice %23 {offsets = [0, 0, 0], sizes = [1, 1, 32], strides = [1, 1, 1]} : vector<1x1x96xf32> to vector<1x1x32xf32>
    %169 = vector.extract_strided_slice %23 {offsets = [0, 0, 32], sizes = [1, 1, 32], strides = [1, 1, 1]} : vector<1x1x96xf32> to vector<1x1x32xf32>
    %cst_36 = arith.constant dense<0.000000e+00> : vector<16x32xf32>
    %170 = vector.multi_reduction <add>, %167, %cst_36 [0] : vector<2x16x32xf32> to vector<16x32xf32>
    %171 = vector.shape_cast %170 : vector<16x32xf32> to vector<1x16x32xf32>
    %cst_37 = arith.constant dense<0.000000e+00> : vector<1x32xf32>
    %172 = vector.multi_reduction <add>, %171, %cst_37 [1] : vector<1x16x32xf32> to vector<1x32xf32>
    %173 = vector.shape_cast %172 : vector<1x32xf32> to vector<1x1x32xf32>
    %cst_38 = arith.constant 3.125000e-02 : f32
    %174 = vector.broadcast %cst_38 : f32 to vector<1x1x32xf32>
    %175 = arith.mulf %173, %174 : vector<1x1x32xf32>
    %176 = arith.mulf %167, %167 : vector<2x16x32xf32>
    %cst_39 = arith.constant dense<0.000000e+00> : vector<16x32xf32>
    %177 = vector.multi_reduction <add>, %176, %cst_39 [0] : vector<2x16x32xf32> to vector<16x32xf32>
    %178 = vector.shape_cast %177 : vector<16x32xf32> to vector<1x16x32xf32>
    %cst_40 = arith.constant dense<0.000000e+00> : vector<1x32xf32>
    %179 = vector.multi_reduction <add>, %178, %cst_40 [1] : vector<1x16x32xf32> to vector<1x32xf32>
    %180 = vector.shape_cast %179 : vector<1x32xf32> to vector<1x1x32xf32>
    %cst_41 = arith.constant 3.125000e-02 : f32
    %181 = vector.broadcast %cst_41 : f32 to vector<1x1x32xf32>
    %182 = arith.mulf %180, %181 : vector<1x1x32xf32>
    %183 = arith.mulf %175, %175 : vector<1x1x32xf32>
    %184 = arith.subf %182, %183 : vector<1x1x32xf32>
    %185 = vector.broadcast %175 : vector<1x1x32xf32> to vector<2x16x32xf32>
    %186 = arith.subf %167, %185 : vector<2x16x32xf32>
    %cst_42 = arith.constant 9.99999974E-6 : f32
    %187 = vector.broadcast %cst_42 : f32 to vector<1x1x32xf32>
    %188 = arith.addf %184, %187 : vector<1x1x32xf32>
    %189 = math.rsqrt %188 : vector<1x1x32xf32>
    %190 = vector.broadcast %189 : vector<1x1x32xf32> to vector<2x16x32xf32>
    %191 = arith.mulf %186, %190 : vector<2x16x32xf32>
    %192 = vector.broadcast %168 : vector<1x1x32xf32> to vector<2x16x32xf32>
    %193 = arith.mulf %191, %192 : vector<2x16x32xf32>
    %194 = vector.broadcast %169 : vector<1x1x32xf32> to vector<2x16x32xf32>
    %195 = arith.addf %193, %194 : vector<2x16x32xf32>
    %196 = arith.addf %195, %129 : vector<2x16x32xf32>
    %197 = vector.extract_strided_slice %15 {offsets = [0, 0, 0], sizes = [2, 1, 32], strides = [1, 1, 1]} : vector<2x1x96xf32> to vector<2x1x32xf32>
    %198 = vector.broadcast %197 : vector<2x1x32xf32> to vector<2x16x32xf32>
    %199 = arith.addf %196, %198 : vector<2x16x32xf32>
    %cst_43 = arith.constant 0.000000e+00 : f32
    %200 = vector.broadcast %cst_43 : f32 to vector<2x16x32xf32>
    %201 = arith.cmpf ogt, %199, %200 : vector<2x16x32xf32>
    %202 = vector.extract_strided_slice %23 {offsets = [0, 0, 64], sizes = [1, 1, 32], strides = [1, 1, 1]} : vector<1x1x96xf32> to vector<1x1x32xf32>
    %203 = vector.broadcast %202 : vector<1x1x32xf32> to vector<2x16x32xf32>
    %204 = arith.mulf %203, %199 : vector<2x16x32xf32>
    %205 = arith.select %201, %199, %204 : vector<2x16x32xi1>, vector<2x16x32xf32>
    %206 = vector.extract_strided_slice %15 {offsets = [0, 0, 32], sizes = [2, 1, 32], strides = [1, 1, 1]} : vector<2x1x96xf32> to vector<2x1x32xf32>
    %207 = vector.broadcast %206 : vector<2x1x32xf32> to vector<2x16x32xf32>
    %208 = arith.addf %205, %207 : vector<2x16x32xf32>
    %c0_44 = arith.constant 0 : index
    %c0_45 = arith.constant 0 : index
    %c0_46 = arith.constant 0 : index
    %209 = vector.load %arg7[%c0_44, %c0_45, %c0_46] : memref<2x16x32xf32, #tpu.memory_space<vmem>>, vector<2x16x32xf32>
    tpu.vector_store %arg7[%c0_44, %c0_45, %c0_46], %208 {strides = array<i32>} : memref<2x16x32xf32, #tpu.memory_space<vmem>>, vector<2x16x32xf32>,
    return
  }
  func.func @transform_0(%arg0: i32) -> (i32, i32, i32) {
    %c0_i32 = arith.constant 0 : i32
    %c0_i32_0 = arith.constant 0 : i32
    %c0_i32_1 = arith.constant 0 : i32
    %c0_i32_2 = arith.constant 0 : i32
    return %c0_i32, %c0_i32_0, %c0_i32_1 : i32, i32, i32
  }
  func.func @transform_1(%arg0: i32) -> (i32, i32, i32) {
    %c0_i32 = arith.constant 0 : i32
    %c0_i32_0 = arith.constant 0 : i32
    %c0_i32_1 = arith.constant 0 : i32
    %c0_i32_2 = arith.constant 0 : i32
    return %c0_i32, %c0_i32_0, %c0_i32_1 : i32, i32, i32
  }
  func.func @transform_2(%arg0: i32) -> (i32, i32) {
    %c0_i32 = arith.constant 0 : i32
    %c0_i32_0 = arith.constant 0 : i32
    %c0_i32_1 = arith.constant 0 : i32
    return %c0_i32, %c0_i32_0 : i32, i32
  }
  func.func @transform_3(%arg0: i32) -> (i32, i32) {
    %c0_i32 = arith.constant 0 : i32
    %c0_i32_0 = arith.constant 0 : i32
    %c0_i32_1 = arith.constant 0 : i32
    return %c0_i32, %c0_i32_0 : i32, i32
  }
  func.func @transform_4(%arg0: i32) -> (i32, i32, i32) {
    %c0_i32 = arith.constant 0 : i32
    %c0_i32_0 = arith.constant 0 : i32
    %c0_i32_1 = arith.constant 0 : i32
    %c0_i32_2 = arith.constant 0 : i32
    return %c0_i32, %c0_i32_0, %c0_i32_1 : i32, i32, i32
  }
  func.func @transform_5(%arg0: i32) -> (i32, i32) {
    %c0_i32 = arith.constant 0 : i32
    %c0_i32_0 = arith.constant 0 : i32
    %c0_i32_1 = arith.constant 0 : i32
    return %c0_i32, %c0_i32_0 : i32, i32
  }
  func.func @transform_6(%arg0: i32) -> (i32, i32, i32) {
    %c0_i32 = arith.constant 0 : i32
    %c0_i32_0 = arith.constant 0 : i32
    %c0_i32_1 = arith.constant 0 : i32
    %c0_i32_2 = arith.constant 0 : i32
    return %c0_i32, %c0_i32_0, %c0_i32_1 : i32, i32, i32
  }
}

</mosaic_0001>

<bundles_post_ra>
// kernel: cross_attention_forward.1
= control target key start
LH: loop header
LB: loop body
LE: loop exit
PB: predicated region body
PF: predicated region fallthrough
CT: control target
= control target key end

     0   :  { %v50_v1 = vlaneseq  ;;  %vm150_vm0 = vcmask 261120   ;;  %v2221_v10 = vmov 1966171168   ;;  %s2903_s0 = inlined_call_operand.vmem [shape: f32[2,16,32], index: 0, kind: input, shape index: {}]   ;;  %s2904_s1 = inlined_call_operand.vmem [shape: f32[2,16,32], index: 1, kind: input, shape index: {}]   ;;  %s2905_s2 = inlined_call_operand.vmem [shape: bf16[32,32], index: 2, kind: input, shape index: {}]   ;;  %s2906_s3 = inlined_call_operand.vmem [shape: bf16[32,64], index: 3, kind: input, shape index: {}]   ;;  %s2907_s4 = inlined_call_operand.vmem [shape: f32[4,2,96], index: 4, kind: input, shape index: {}]   ;;  %s2908_s5 = inlined_call_operand.vmem [shape: f32[4,96], index: 5, kind: input, shape index: {}]   ;;  %s2909_s6 = inlined_call_operand.hbm [shape: f32[2,16,32], index: 6, kind: output, shape index: {}]  }
   0x1   :  { %v2125_v0 = vld [vmem:[%s2906_s3 + $0x8] sm:$0xff]   ;;  %v2126_v2 = vld [vmem:[%s2906_s3] sm:$0xff]   ;;  %v2291_v7 = vld [vmem:[%s2904_s1 + $0x10] sm:$0xff]  ;;  %v48_v11 = vunpack.c.l.s4 %v2221_v10 }
   0x2   :  { %1947 = vmatprep.subr.bf16.mxu1 %v2125_v0  ;;  %v2279_v3 = vld [vmem:[%s2904_s1] sm:$0xff]  ;;  %v2284_v4 = vld [vmem:[%s2904_s1 + $0x8] sm:$0xff]  ;;  %v51_v5 = vshrl.u32 %v50_v1, 7  ;;  %v2296_v8 = vld [vmem:[%s2904_s1 + $0x18] sm:$0xff] }
   0x3   :  { %1948 = vmatpush3.bf16.msra.mxu1 %v2125_v0  ;;  %v132_v6 = vpack.c.bf16 %v2284_v4, %v2279_v3  ;;  %v1871_v9 = vld.sshfl [vmem:[%s2907_s4] sm:$0x11 pattern:$0x75316420]  ;;  %v49_v15 = vunpack.c.0.s8 %v48_v11  ;;  %v133_v19 = vpack.c.bf16 %v2296_v8, %v2291_v7  ;;  %v2127_v22 = vld [vmem:[%s2905_s2 + $0x8] sm:$0xff]  }
   0x4   :  { %1949 = vmatprep.subr.bf16.mxu1 %v2126_v2  ;;  %v2301_v12 = vsub.s32 0, %v51_v5  ;;  %v37_v13 = vld [vmem:[%s2908_s5] sm:$0xf]  ;;  %v478_v14 = vsub.s32 2, %v51_v5  ;;  %v46_v16 = vcombine.high %v1871_v9, %v1871_v9  ;;  %v1773_v17 = vsub.s32 3, %v51_v5 }
   0x5   :  { %1951 = vmatprep.mubr.msk.bf16.mxu1 %vm150_vm0, %v132_v6  ;;  %v359_v18 = vsub.s32 1, %v51_v5  ;;  %v2317_v23 = vsub.s32 %v49_v15, %v51_v5  ;;  %v2128_v25 = vld [vmem:[%s2905_s2] sm:$0xff]  }
   0x6   :  { %v2310_v20 = vrot.slane %v37_v13, %v2301_v12  ;;  %v2312_v21 = vrot.slane %v37_v13, %v478_v14  ;;  %v2319_v24 = vrot.slane %v37_v13, %v1773_v17 }
   0x7   :  { %1950 = vmatpush3.bf16.msra.mxu1 %v2126_v2 }
   0x8   :  { %11 = vsyncpa [#allocation3], 0  ;;  %s2222_s14 = smov 96   ;;  %v2326_v26 = vrot.slane %v37_v13, %v359_v18  ;;  %1939 = vmatprep.subr.bf16.mxu0 %v2127_v22  ;;  %v53_v27 = vrot.slane %v1871_v9, %v2317_v23  ;;  %v60_v28 = vrot.slane %v46_v16, %v2317_v23  ;;  %s2223_s2 = smov 32   ;;  %v2369_v37 = vld [vmem:[%s2903_s0] sm:$0xff]  ;;  %v2374_v38 = vld [vmem:[%s2903_s0 + $0x8] sm:$0xff] }
   0x9   :  { %439 = vrot.lane.b32.xlu1 %v2310_v20, %s2222_s14  ;;  %v1872_v29 = vld.sshfl [vmem:[%s2907_s4 + $0x2] sm:$0x11 pattern:$0x75316420]  ;;  %1940 = vmatpush3.bf16.msra.mxu0 %v2127_v22  ;;  %v130_v39 = vpack.c.bf16 %v2374_v38, %v2369_v37  ;;  %v2381_v40 = vld [vmem:[%s2903_s0 + $0x10] sm:$0xff]  ;;  %v2386_v41 = vld [vmem:[%s2903_s0 + $0x18] sm:$0xff] }
   0xa   :  { %1952 = vmatmul.mubr.msk.bf16.vlgmr.msra.gmra.mxu1 %vm150_vm0, %v133_v19  ;;  %1941 = vmatprep.subr.bf16.mxu0 %v2128_v25  ;;  %v2335_v30 = vrot.slane %v53_v27, %v2301_v12  ;;  %v69_v31 = vcombine.high %v1872_v29, %v1872_v29  ;;  %v2342_v32 = vrot.slane %v60_v28, %v2301_v12  ;;  %vm389_vm1 = vcmask 523264   ;;  %s2226_s26 = smov 120   ;;  %s2227_s27 = smov 112  }
   0xb   :  { %v76_v35 = vrot.slane %v1872_v29, %v2317_v23  ;;  %v131_v42 = vpack.c.bf16 %v2386_v41, %v2381_v40  ;;  %1943 = vmatprep.mubr.msk.bf16.mxu0 %vm150_vm0, %v130_v39  ;;  %vm2225_vm6 = vmmov 0   ;;  %vm700_vm11 = vcmask 64512   ;;  %s2228_s28 = smov 104   ;;  %s2229_s29 = smov 8  }
   0xc   :  { %291 = vrot.lane.b32.xlu0 %v2335_v30, %s2222_s14  ;;  %v83_v33 = vrot.slane %v69_v31, %v2317_v23  ;;  %vm1093_vm12 = vcmask 130048   ;;  %s2230_s30 = smov 16   ;;  %s2231_s3 = smov 24   ;;  %vm1718_vm13 = vcmask 195584  }
   0xd   :  { %447 = vrot.lane.b32.xlu1 %v2326_v26, %s2222_s14  ;;  %1942 = vmatpush3.bf16.msra.mxu0 %v2128_v25  ;;  %v2362_v36 = vrot.slane %v76_v35, %v2301_v12  ;;  %s2233_s9 = smov [#allocation2]  }
   0xe   :  { %v2352_v34 = vrot.slane %v83_v33, %v2301_v12  ;;  %s1860_s10 = sshll.u32 %s2233_s9, 4  ;;  %s1861_s10 = int_to_ptr.vmem [resolvable:$true] %s1860_s10 }
   0xf   :  { %s2199_s11 = scalar_lea.vmem %s1861_s10, 512  ;;  %p2204_p1 = scmp.lt.s32.totalorder %s1861_s10, %s1861_s10 }
  0x10   :  { %293 = vrot.lane.b32.xlu0 %v2342_v32, %s2222_s14  ;;  %1944 = vmatmul.mubr.msk.bf16.vlgmr.msra.gmra.mxu0 %vm150_vm0, %v131_v42  ;;  %p2200_p0 = scmp.ne.s32.totalorder %s1861_s10, %s2199_s11  ;;  %p2205_p2 = scmp.lt.s32.totalorder %s2199_s11, %s2199_s11 }
  0x11   :  { %375 = vrot.lane.b32.xlu1 %v2284_v4, %s2223_s2 }
  0x12   :  { %p2206_p3 = por %p2205_p2, %p2204_p1 }
  0x14   :  { %373 = vrot.lane.b32.xlu0 %v2279_v3, %s2223_s2  ;;  %p2207_p4 = pnand %p2206_p3, %p2200_p0 }
  0x15   :  { %379 = vrot.lane.b32.xlu1 %v2296_v8, %s2223_s2 }
  0x18   :  { %377 = vrot.lane.b32.xlu0 %v2291_v7, %s2223_s2 }
  0x19   :  { %504 = vrot.lane.b32.xlu1 %v2352_v34, %s2222_s14 }
  0x1c   :  { %502 = vrot.lane.b32.xlu0 %v2362_v36, %s2222_s14 }
  0x7e   :  { %v292_v43 = vpop.permute.xlu0 %291 }
  0x82   :  { %v294_v44 = vpop.permute.xlu0 %293 }
  0xca   :  { %v1953_v45 = vpop.f32.mrf.mxu1 }
  0xcb   :  { %v299_v46 = vadd.f32 %v1953_v45, %v294_v44 }
  0xcc   :  { %v276_v47 = vpop.f32.mrf.mxu1 }
  0xcd   :  { %v297_v48 = vadd.f32 %v292_v43, %v276_v47  ;;  %v408_v50 = vmul.f32 %v299_v46, %v299_v46  ;;  %v391_v55 = vsel %vm389_vm1, %v299_v46, 0.0  ;;  %v440_v47 = vpop.permute.xlu1 %439 }
  0xce   :  { %v1954_v49 = vpop.f32.mrf.mxu1 }
  0xcf   :  { %v390_v51 = vsel %vm389_vm1, %v297_v48, 0.0  ;;  %v406_v52 = vmul.f32 %v297_v48, %v297_v48  ;;  %v300_v53 = vadd.f32 %v1954_v49, %v294_v44  ;;  %v411_v60 = vsel %vm389_vm1, %v408_v50, 0.0  ;;  %v374_v50 = vpop.permute.xlu0 %373 }
  0xd0   :  { %v279_v54 = vpop.f32.mrf.mxu1  ;;  %v392_v59 = vadd.f32 %v391_v55, %v390_v51 }
  0xd1   :  { %v410_v56 = vsel %vm389_vm1, %v406_v52, 0.0  ;;  %v409_v57 = vmul.f32 %v300_v53, %v300_v53  ;;  %v298_v58 = vadd.f32 %v292_v43, %v279_v54  ;;  %v394_v61 = vsel %vm389_vm1, %v300_v53, 0.0  ;;  %v448_v49 = vpop.permute.xlu1 %447 }
  0xd2   :  { %v412_v0 = vadd.f32 %v411_v60, %v410_v56  ;;  %v396_v6 = vsel %vm389_vm1, %v392_v59, 0.0 }
  0xd3   :  { %v393_v62 = vsel %vm389_vm1, %v298_v58, 0.0  ;;  %v407_v63 = vmul.f32 %v298_v58, %v298_v58  ;;  %v414_v2 = vsel %vm389_vm1, %v409_v57, 0.0  ;;  %v378_v59 = vpop.permute.xlu0 %377 }
  0xd4   :  { %v395_v1 = vadd.f32 %v394_v61, %v393_v62  ;;  %v416_v13 = vsel %vm389_vm1, %v412_v0, 0.0 }
  0xd5   :  { %v413_v5 = vsel %vm389_vm1, %v407_v63, 0.0  ;;  %v376_v51 = vpop.permute.xlu1 %375 }
  0xd6   :  { %v397_v9 = vsel %vm389_vm1, %v395_v1, 0.0  ;;  %v415_v10 = vadd.f32 %v414_v2, %v413_v5 }
  0xd7   :  { %v398_v11 = vadd.f32 %v397_v9, %v396_v6  ;;  %v386_v9 = vsel %vm150_vm0, %v2284_v4, %v376_v51 }
  0xd8   :  { %v417_v14 = vsel %vm389_vm1, %v415_v10, 0.0 }
  0xd9   :  { %v399_v15 = vrot.slane %v398_v11, 4  ;;  %v418_v16 = vadd.f32 %v417_v14, %v416_v13  ;;  %v380_v2 = vpop.permute.xlu1 %379  ;;  %v387_v13 = vsel %vm150_vm0, %v2291_v7, %v378_v59  ;;  %v503_v14 = vpop.permute.xlu0 %502 }
  0xda   :  { %v1945_v7 = vpop.f32.mrf.mxu0 }
  0xdb   :  { %v400_v17 = vadd.f32 %v399_v15, %v398_v11  ;;  %v419_v18 = vrot.slane %v418_v16, 4 }
  0xdd   :  { %v401_v19 = vrot.slane %v400_v17, 2  ;;  %v420_v22 = vadd.f32 %v419_v18, %v418_v16 }
  0xdf   :  { %v402_v25 = vadd.f32 %v401_v19, %v400_v17  ;;  %v421_v27 = vrot.slane %v420_v22, 2 }
  0xe1   :  { %v403_v28 = vrot.slane %v402_v25, 1  ;;  %v422_v29 = vadd.f32 %v421_v27, %v420_v22  ;;  %v505_v22 = vpop.permute.xlu1 %504  ;;  %v191_v27 = vpop.f32.mrf.mxu0 }
  0xe3   :  { %v404_v31 = vadd.f32 %v403_v28, %v402_v25  ;;  %v423_v33 = vrot.slane %v422_v29, 1  ;;  %v218_v25 = vadd.f32 %v1945_v7, %v2342_v32 }
  0xe5   :  { %v405_v35 = vmul.f32 0.03125, %v404_v31  ;;  %v424_v39 = vadd.f32 %v423_v33, %v422_v29  ;;  %v302_v28 = vsel %vm150_vm0, %v218_v25, 0.0  ;;  %v319_v29 = vmul.f32 %v218_v25, %v218_v25  ;;  %v1946_v33 = vpop.f32.mrf.mxu0 }
  0xe6   :  { %v216_v31 = vadd.f32 %v2335_v30, %v191_v27 }
  0xe7   :  { %v425_v42 = vmul.f32 0.03125, %v424_v39  ;;  %v426_v43 = vmul.f32 %v405_v35, %v405_v35  ;;  %v429_v52 = vsub.f32 %v298_v58, %v405_v35  ;;  %v428_v54 = vsub.f32 %v297_v48, %v405_v35 }
  0xe8   :  { %v431_v55 = vsub.f32 %v300_v53, %v405_v35  ;;  %v430_v56 = vsub.f32 %v299_v46, %v405_v35  ;;  %v385_v46 = vsel %vm150_vm0, %v2279_v3, %v374_v50  ;;  %v388_v53 = vsel %vm150_vm0, %v2296_v8, %v380_v2 }
  0xe9   :  { %v427_v44 = vsub.f32 %v425_v42, %v426_v43  ;;  %v322_v35 = vsel %vm150_vm0, %v319_v29, 0.0  ;;  %v301_v39 = vsel %vm150_vm0, %v216_v31, 0.0  ;;  %v317_v42 = vmul.f32 %v216_v31, %v216_v31 }
  0xea   :  { %v219_v43 = vadd.f32 %v1946_v33, %v2342_v32  ;;  %v1873_v33 = vld.sshfl [vmem:[%s2907_s4 + $0x4] sm:$0x11 pattern:$0x75316420] }
  0xeb   :  { %v432_v45 = vadd.f32 1e-05, %v427_v44  ;;  %v303_v44 = vadd.f32 %v302_v28, %v301_v39 }
  0xec   :  { %v320_v50 = vmul.f32 %v219_v43, %v219_v43 }
  0xed   :  { %2129 = vrsqrt.f32 %v432_v45  ;;  %v194_v45 = vpop.f32.mrf.mxu0 }
  0xee   :  { %v217_v51 = vadd.f32 %v2335_v30, %v194_v45 }
  0xfa   :  { %v2130_v57 = vpop.eup %2129 }
  0xfb   :  { %v435_v60 = vmul.f32 %v2130_v57, %v429_v52  ;;  %v434_v61 = vmul.f32 %v2130_v57, %v428_v54  ;;  %v437_v62 = vmul.f32 %v2130_v57, %v431_v55  ;;  %v436_v63 = vmul.f32 %v2130_v57, %v430_v56 }
  0xfc   :  { %v325_v54 = vsel %vm150_vm0, %v320_v50, 0.0  ;;  %v304_v55 = vsel %vm150_vm0, %v217_v51, 0.0  ;;  %v318_v56 = vmul.f32 %v217_v51, %v217_v51  ;;  %v307_v57 = vsel %vm150_vm0, %v303_v44, 0.0 }
  0xfd   :  { %v443_v0 = vmul.f32 %v440_v47, %v435_v60  ;;  %v442_v1 = vmul.f32 %v440_v47, %v434_v61  ;;  %v445_v5 = vmul.f32 %v440_v47, %v437_v62  ;;  %v444_v6 = vmul.f32 %v440_v47, %v436_v63 }
  0xfe   :  { %v321_v47 = vsel %vm150_vm0, %v317_v42, 0.0  ;;  %v324_v32 = vsel %vm150_vm0, %v318_v56, 0.0 }
  0xff   :  { %v451_v10 = vadd.f32 %v448_v49, %v443_v0  ;;  %v450_v11 = vadd.f32 %v448_v49, %v442_v1  ;;  %v453_v58 = vadd.f32 %v448_v49, %v445_v5  ;;  %v452_v48 = vadd.f32 %v448_v49, %v444_v6 }
 0x100   :  { %v305_v49 = vsel %vm150_vm0, %v219_v43, 0.0  ;;  %v323_v52 = vadd.f32 %v322_v35, %v321_v47  ;;  %v326_v62 = vadd.f32 %v325_v54, %v324_v32  ;;  %v92_v47 = vcombine.high %v1873_v33, %v1873_v33 }
 0x101   :  { %v455_v15 = vadd.f32 %v451_v10, %v386_v9  ;;  %v454_v16 = vadd.f32 %v450_v11, %v385_v46  ;;  %v457_v17 = vadd.f32 %v453_v58, %v388_v53  ;;  %v456_v18 = vadd.f32 %v452_v48, %v387_v13 }
 0x102   :  { %v306_v59 = vadd.f32 %v305_v49, %v304_v55  ;;  %v327_v60 = vsel %vm150_vm0, %v323_v52, 0.0  ;;  %v328_v0 = vsel %vm150_vm0, %v326_v62, 0.0  ;;  %v106_v55 = vrot.slane %v92_v47, %v2317_v23 }
 0x103   :  { %v2412_v19 = vadd.f32 %v503_v14, %v454_v16  ;;  %v2414_v4 = vadd.f32 %v503_v14, %v455_v15  ;;  %v2420_v3 = vadd.f32 %v505_v22, %v456_v18  ;;  %v2422_v8 = vadd.f32 %v505_v22, %v457_v17 }
 0x104   :  { %v308_v61 = vsel %vm150_vm0, %v306_v59, 0.0  ;;  %v329_v1 = vadd.f32 %v328_v0, %v327_v60  ;;  %v495_v62 = vrot.slane %v106_v55, %v2301_v12 }
 0x105   :  { %522 = vrot.lane.b32.xlu1 %v2414_v4, %s2223_s2  ;;  %520 = vrot.lane.b32.xlu0 %v2412_v19, %s2223_s2  ;;  %v309_v63 = vadd.f32 %v308_v61, %v307_v57  ;;  %vm513_vm7 = vcmp.gt.f32.partialorder %v2414_v4, 0.0  ;;  %vm512_vm8 = vcmp.gt.f32.partialorder %v2412_v19, 0.0  ;;  %vm515_vm9 = vcmp.gt.f32.partialorder %v2422_v8, 0.0 }
 0x106   :  { %v330_v5 = vrot.slane %v329_v1, 4  ;;  %vm514_vm10 = vcmp.gt.f32.partialorder %v2420_v3, 0.0 }
 0x107   :  { %v310_v30 = vrot.slane %v309_v63, 4 }
 0x108   :  { %v331_v9 = vadd.f32 %v330_v5, %v329_v1 }
 0x109   :  { %526 = vrot.lane.b32.xlu1 %v2422_v8, %s2223_s2  ;;  %524 = vrot.lane.b32.xlu0 %v2420_v3, %s2223_s2  ;;  %v311_v2 = vadd.f32 %v310_v30, %v309_v63 }
 0x10a   :  { %v332_v11 = vrot.slane %v331_v9, 2 }
 0x10b   :  { %v312_v6 = vrot.slane %v311_v2, 2 }
 0x10c   :  { %v333_v48 = vadd.f32 %v332_v11, %v331_v9  ;;  %v2224_v9 = vmov 0.0  }
 0x10d   :  { %v313_v10 = vadd.f32 %v312_v6, %v311_v2  ;;  %1955 = vmatprep.subr.bf16.mxu0 %v2224_v9  ;;  %1961 = vmatprep.subr.bf16.mxu1 %v2224_v9 }
 0x10e   :  { %v334_v53 = vrot.slane %v333_v48, 1  ;;  %1957 = vmatprep.mubr.msk.bf16.mxu0 %vm2225_vm6, %v2224_v9  ;;  %1963 = vmatprep.mubr.msk.bf16.mxu1 %vm2225_vm6, %v2224_v9 }
 0x10f   :  { %v314_v58 = vrot.slane %v313_v10, 1 }
 0x110   :  { %v335_v14 = vadd.f32 %v334_v53, %v333_v48 }
 0x111   :  { %v315_v46 = vadd.f32 %v314_v58, %v313_v10 }
 0x112   :  { %v336_v15 = vmul.f32 0.03125, %v335_v14 }
 0x113   :  { %v316_v13 = vmul.f32 0.03125, %v315_v46 }
 0x115   :  { %v337_v16 = vmul.f32 %v316_v13, %v316_v13  ;;  %v340_v22 = vsub.f32 %v217_v51, %v316_v13  ;;  %v339_v7 = vsub.f32 %v216_v31, %v316_v13  ;;  %v341_v27 = vsub.f32 %v218_v25, %v316_v13 }
 0x116   :  { %v342_v28 = vsub.f32 %v219_v43, %v316_v13 }
 0x117   :  { %v338_v17 = vsub.f32 %v336_v15, %v337_v16 }
 0x119   :  { %v343_v18 = vadd.f32 1e-05, %v338_v17 }
 0x11b   :  { %2131 = vrsqrt.f32 %v343_v18 }
 0x128   :  { %v2132_v29 = vpop.eup %2131 }
 0x129   :  { %v346_v35 = vmul.f32 %v2132_v29, %v340_v22  ;;  %v347_v39 = vmul.f32 %v2132_v29, %v341_v27  ;;  %v348_v42 = vmul.f32 %v2132_v29, %v342_v28  ;;  %v345_v44 = vmul.f32 %v2132_v29, %v339_v7 }
 0x12b   :  { %v354_v45 = vmul.f32 %v2310_v20, %v346_v35  ;;  %v355_v49 = vmul.f32 %v2310_v20, %v347_v39  ;;  %v356_v50 = vmul.f32 %v2310_v20, %v348_v42  ;;  %v353_v31 = vmul.f32 %v2310_v20, %v345_v44 }
 0x12c   :  { %v99_v20 = vrot.slane %v1873_v33, %v2317_v23 }
 0x12d   :  { %v362_v25 = vadd.f32 %v2326_v26, %v354_v45  ;;  %v363_v43 = vadd.f32 %v2326_v26, %v355_v49  ;;  %v364_v51 = vadd.f32 %v2326_v26, %v356_v50  ;;  %v361_v52 = vadd.f32 %v2326_v26, %v353_v31 }
 0x12e   :  { %v491_v63 = vrot.slane %v99_v20, %v2301_v12 }
 0x12f   :  { %v366_v54 = vadd.f32 %v362_v25, %v2374_v38  ;;  %v367_v56 = vadd.f32 %v363_v43, %v2381_v40  ;;  %v368_v57 = vadd.f32 %v364_v51, %v2386_v41  ;;  %v365_v59 = vadd.f32 %v361_v52, %v2369_v37 }
 0x131   :  { %v469_v32 = vadd.f32 %v2362_v36, %v366_v54  ;;  %v470_v60 = vadd.f32 %v2352_v34, %v367_v56  ;;  %v471_v61 = vadd.f32 %v2352_v34, %v368_v57  ;;  %v468_v26 = vadd.f32 %v2362_v36, %v365_v59 }
 0x133   :  { %vm473_vm2 = vcmp.gt.f32.partialorder %v469_v32, 0.0  ;;  %v481_v38 = vmul.f32 %v2312_v21, %v469_v32  ;;  %v482_v40 = vmul.f32 %v2312_v21, %v470_v60  ;;  %v483_v41 = vmul.f32 %v2312_v21, %v471_v61 }
 0x134   :  { %v480_v37 = vmul.f32 %v2312_v21, %v468_v26  ;;  %vm474_vm3 = vcmp.gt.f32.partialorder %v470_v60, 0.0  ;;  %vm475_vm4 = vcmp.gt.f32.partialorder %v471_v61, 0.0  ;;  %vm472_vm5 = vcmp.gt.f32.partialorder %v468_v26, 0.0 }
 0x135   :  { %v486_v0 = vsel %vm474_vm3, %v470_v60, %v482_v40  ;;  %v487_v34 = vsel %vm475_vm4, %v471_v61, %v483_v41  ;;  %v485_v36 = vsel %vm473_vm2, %v469_v32, %v481_v38 }
 0x136   :  { %v484_v30 = vsel %vm472_vm5, %v468_v26, %v480_v37  ;;  %v2471_v1 = vadd.f32 %v495_v62, %v486_v0  ;;  %v2473_v2 = vadd.f32 %v495_v62, %v487_v34  ;;  %v2477_v6 = vadd.f32 %v491_v63, %v485_v36 }
 0x137   :  { %v2475_v5 = vadd.f32 %v491_v63, %v484_v30 }
 0x138   :  { %v2080_v47 = vpack.i.bf16 %v2473_v2, %v2471_v1  ;;  %v649_v50 = vpack.c.bf16 %v2473_v2, %v2471_v1 }
 0x139   :  { %v2070_v49 = vpack.i.bf16 %v2477_v6, %v2475_v5  ;;  %v648_v31 = vpack.c.bf16 %v2477_v6, %v2475_v5 }
 0x177   :  { %v523_v10 = vpop.permute.xlu1 %522  ;;  %v521_v11 = vpop.permute.xlu0 %520 }
 0x178   :  { %v533_v58 = vmul.f32 %v523_v10, %v2312_v21  ;;  %v532_v48 = vmul.f32 %v521_v11, %v2312_v21 }
 0x17a   :  { %542 = vrot.lane.b32.xlu1 %v533_v58, %s2222_s14  ;;  %540 = vrot.lane.b32.xlu0 %v532_v48, %s2222_s14 }
 0x17b   :  { %v527_v46 = vpop.permute.xlu1 %526  ;;  %v525_v53 = vpop.permute.xlu0 %524 }
 0x17c   :  { %v535_v13 = vmul.f32 %v527_v46, %v2312_v21  ;;  %v534_v14 = vmul.f32 %v525_v53, %v2312_v21 }
 0x17e   :  { %546 = vrot.lane.b32.xlu1 %v535_v13, %s2222_s14  ;;  %544 = vrot.lane.b32.xlu0 %v534_v14, %s2222_s14 }
 0x182   :  { %558 = vrot.lane.b32.xlu1 %v495_v62, %s2222_s14  ;;  %556 = vrot.lane.b32.xlu0 %v491_v63, %s2222_s14 }
 0x1ec   :  { %v543_v15 = vpop.permute.xlu1 %542  ;;  %v541_v16 = vpop.permute.xlu0 %540 }
 0x1ed   :  { %v553_v21 = vsel %vm513_vm7, %v2414_v4, %v543_v15  ;;  %v552_v22 = vsel %vm512_vm8, %v2412_v19, %v541_v16 }
 0x1f0   :  { %v547_v17 = vpop.permute.xlu1 %546  ;;  %v545_v18 = vpop.permute.xlu0 %544 }
 0x1f1   :  { %v555_v7 = vsel %vm515_vm9, %v2422_v8, %v547_v17  ;;  %v554_v27 = vsel %vm514_vm10, %v2420_v3, %v545_v18 }
 0x1f4   :  { %v559_v28 = vpop.permute.xlu1 %558  ;;  %v557_v29 = vpop.permute.xlu0 %556 }
 0x1f5   :  { %v2503_v33 = vadd.f32 %v559_v28, %v554_v27  ;;  %v2505_v35 = vadd.f32 %v559_v28, %v555_v7  ;;  %v2507_v39 = vadd.f32 %v557_v29, %v552_v22  ;;  %v2509_v42 = vadd.f32 %v557_v29, %v553_v21 }
 0x1f7   :  { %v2075_v4 = vpack.i.bf16 %v2505_v35, %v2503_v33  ;;  %v2065_v19 = vpack.i.bf16 %v2509_v42, %v2507_v39  ;;  %v692_v3 = vpack.c.bf16 %v2509_v42, %v2507_v39  ;;  %v2519_v8 = vpack.c.bf16 %v2505_v35, %v2503_v33 }
 0x1f9   :  { %2076 = vrot.lane.b32.xlu1 %v2075_v4, %s2226_s26  ;;  %2066 = vrot.lane.b32.xlu0 %v2065_v19, %s2226_s26  ;;  %v705_v44 = vsel %vm700_vm11, %v692_v3, 0  ;;  %v752_v45 = vsel %vm700_vm11, %v2519_v8, 0 }
 0x1fa   :  { %1956 = vmatpush3.bf16.xpose.msra.mxu0 %v705_v44  ;;  %1962 = vmatpush3.bf16.xpose.msra.mxu1 %v752_v45 }
 0x1fb   :  { %1967 = vmatprep.subr.bf16.mxu0 %v2224_v9  ;;  %1973 = vmatprep.subr.bf16.mxu1 %v2224_v9 }
 0x1fd   :  { %2081 = vrot.lane.b32.xlu1 %v2080_v47, %s2226_s26  ;;  %2071 = vrot.lane.b32.xlu0 %v2070_v49, %s2226_s26 }
 0x201   :  { %2096 = vrot.lane.b32.xlu1 %v2075_v4, %s2227_s27  ;;  %1964 = vmatmul.mubr.msk.bf16.vlgmr.msra.gmra.mxu1 %vm700_vm11, %v649_v50 }
 0x202   :  { %2086 = vrot.lane.b32.xlu0 %v2065_v19, %s2227_s27  ;;  %1958 = vmatmul.mubr.msk.bf16.vlgmr.msra.gmra.mxu0 %vm700_vm11, %v648_v31 }
 0x203   :  { %1975 = vmatprep.mubr.msk.bf16.mxu1 %vm2225_vm6, %v2224_v9  ;;  %1969 = vmatprep.mubr.msk.bf16.mxu0 %vm2225_vm6, %v2224_v9 }
 0x205   :  { %2101 = vrot.lane.b32.xlu1 %v2080_v47, %s2227_s27 }
 0x206   :  { %2091 = vrot.lane.b32.xlu0 %v2070_v49, %s2227_s27 }
 0x209   :  { %2111 = vrot.lane.b32.xlu1 %v2075_v4, %s2228_s28 }
 0x20a   :  { %2106 = vrot.lane.b32.xlu0 %v2065_v19, %s2228_s28 }
 0x20d   :  { %2121 = vrot.lane.b32.xlu1 %v2080_v47, %s2228_s28 }
 0x20e   :  { %2116 = vrot.lane.b32.xlu0 %v2070_v49, %s2228_s28 }
 0x211   :  { %1279 = vrot.lane.b32.xlu1 %v692_v3, %s2222_s14 }
 0x26b   :  { %v2077_v25 = vpop.permute.xlu1 %2076  ;;  %v2067_v43 = vpop.permute.xlu0 %2066 }
 0x26c   :  { %v2079_v51 = vunpack.i.h.bf16 %v2077_v25  ;;  %v2078_v52 = vunpack.i.l.bf16 %v2077_v25  ;;  %v2069_v54 = vunpack.i.h.bf16 %v2067_v43  ;;  %v2068_v55 = vunpack.i.l.bf16 %v2067_v43 }
 0x26e   :  { %v2541_v56 = vpack.c.bf16 %v2079_v51, %v2078_v52  ;;  %v2543_v57 = vpack.c.bf16 %v2069_v54, %v2068_v55 }
 0x26f   :  { %v2082_v59 = vpop.permute.xlu1 %2081  ;;  %v2072_v20 = vpop.permute.xlu0 %2071 }
 0x270   :  { %v799_v32 = vsel %vm700_vm11, %v2543_v57, 0  ;;  %v846_v60 = vsel %vm700_vm11, %v2541_v56, 0  ;;  %v2084_v61 = vunpack.i.h.bf16 %v2082_v59  ;;  %v2083_v26 = vunpack.i.l.bf16 %v2082_v59 }
 0x271   :  { %1968 = vmatpush3.bf16.xpose.msra.mxu0 %v799_v32  ;;  %1974 = vmatpush3.bf16.xpose.msra.mxu1 %v846_v60  ;;  %v2074_v38 = vunpack.i.h.bf16 %v2072_v20  ;;  %v2073_v62 = vunpack.i.l.bf16 %v2072_v20 }
 0x272   :  { %1979 = vmatprep.subr.bf16.mxu0 %v2224_v9  ;;  %1985 = vmatprep.subr.bf16.mxu1 %v2224_v9  ;;  %v651_v36 = vpack.c.bf16 %v2084_v61, %v2083_v26 }
 0x273   :  { %v2097_v40 = vpop.permute.xlu1 %2096  ;;  %v650_v10 = vpack.c.bf16 %v2074_v38, %v2073_v62 }
 0x274   :  { %v2099_v41 = vunpack.i.h.bf16 %v2097_v40  ;;  %v2098_v37 = vunpack.i.l.bf16 %v2097_v40  ;;  %v2087_v63 = vpop.permute.xlu0 %2086 }
 0x275   :  { %v2089_v0 = vunpack.i.h.bf16 %v2087_v63  ;;  %v2088_v34 = vunpack.i.l.bf16 %v2087_v63 }
 0x276   :  { %v2551_v30 = vpack.c.bf16 %v2099_v41, %v2098_v37 }
 0x277   :  { %v2553_v11 = vpack.c.bf16 %v2089_v0, %v2088_v34  ;;  %v2102_v58 = vpop.permute.xlu1 %2101 }
 0x278   :  { %v2092_v48 = vpop.permute.xlu0 %2091  ;;  %v940_v46 = vsel %vm700_vm11, %v2551_v30, 0  ;;  %1970 = vmatmul.mubr.msk.bf16.vlgmr.msra.gmra.mxu0 %vm700_vm11, %v650_v10  ;;  %1976 = vmatmul.mubr.msk.bf16.vlgmr.msra.gmra.mxu1 %vm700_vm11, %v651_v36  ;;  %v2104_v13 = vunpack.i.h.bf16 %v2102_v58  ;;  %v2103_v14 = vunpack.i.l.bf16 %v2102_v58 }
 0x279   :  { %v893_v53 = vsel %vm700_vm11, %v2553_v11, 0  ;;  %1986 = vmatpush3.bf16.xpose.msra.mxu1 %v940_v46  ;;  %v2094_v15 = vunpack.i.h.bf16 %v2092_v48  ;;  %v2093_v16 = vunpack.i.l.bf16 %v2092_v48  ;;  %1987 = vmatprep.mubr.msk.bf16.mxu1 %vm2225_vm6, %v2224_v9 }
 0x27a   :  { %1980 = vmatpush3.bf16.xpose.msra.mxu0 %v893_v53  ;;  %1981 = vmatprep.mubr.msk.bf16.mxu0 %vm2225_vm6, %v2224_v9  ;;  %v653_v29 = vpack.c.bf16 %v2104_v13, %v2103_v14 }
 0x27b   :  { %v2112_v17 = vpop.permute.xlu1 %2111  ;;  %1991 = vmatprep.subr.bf16.mxu0 %v2224_v9  ;;  %1997 = vmatprep.subr.bf16.mxu1 %v2224_v9  ;;  %v652_v4 = vpack.c.bf16 %v2094_v15, %v2093_v16 }
 0x27c   :  { %v2114_v18 = vunpack.i.h.bf16 %v2112_v17  ;;  %v2113_v21 = vunpack.i.l.bf16 %v2112_v17  ;;  %v2107_v22 = vpop.permute.xlu0 %2106 }
 0x27d   :  { %v2109_v7 = vunpack.i.h.bf16 %v2107_v22  ;;  %v2108_v27 = vunpack.i.l.bf16 %v2107_v22 }
 0x27e   :  { %v2567_v28 = vpack.c.bf16 %v2114_v18, %v2113_v21 }
 0x27f   :  { %v2569_v19 = vpack.c.bf16 %v2109_v7, %v2108_v27  ;;  %v2122_v3 = vpop.permute.xlu1 %2121 }
 0x280   :  { %v2117_v44 = vpop.permute.xlu0 %2116  ;;  %v1034_v45 = vsel %vm700_vm11, %v2567_v28, 0  ;;  %1988 = vmatmul.mubr.msk.bf16.vlgmr.msra.gmra.mxu1 %vm700_vm11, %v653_v29  ;;  %v2124_v49 = vunpack.i.h.bf16 %v2122_v3  ;;  %v2123_v50 = vunpack.i.l.bf16 %v2122_v3 }
 0x281   :  { %1982 = vmatmul.mubr.msk.bf16.vlgmr.msra.gmra.mxu0 %vm700_vm11, %v652_v4  ;;  %v987_v47 = vsel %vm700_vm11, %v2569_v19, 0  ;;  %1998 = vmatpush3.bf16.xpose.msra.mxu1 %v1034_v45  ;;  %v2119_v31 = vunpack.i.h.bf16 %v2117_v44  ;;  %v2118_v25 = vunpack.i.l.bf16 %v2117_v44 }
 0x282   :  { %1992 = vmatpush3.bf16.xpose.msra.mxu0 %v987_v47  ;;  %1993 = vmatprep.mubr.msk.bf16.mxu0 %vm2225_vm6, %v2224_v9  ;;  %v655_v43 = vpack.c.bf16 %v2124_v49, %v2123_v50 }
 0x283   :  { %1999 = vmatprep.mubr.msk.bf16.mxu1 %vm2225_vm6, %v2224_v9  ;;  %2003 = vmatprep.subr.bf16.mxu0 %v2224_v9  ;;  %v654_v51 = vpack.c.bf16 %v2119_v31, %v2118_v25  ;;  %v1280_v52 = vpop.permute.xlu1 %1279 }
 0x284   :  { %2009 = vmatprep.subr.bf16.mxu1 %v2224_v9 }
 0x288   :  { %2000 = vmatmul.mubr.msk.bf16.vlgmr.msra.gmra.mxu1 %vm700_vm11, %v655_v43 }
 0x289   :  { %1994 = vmatmul.mubr.msk.bf16.vlgmr.msra.gmra.mxu0 %vm700_vm11, %v654_v51  ;;  %2011 = vmatprep.mubr.msk.bf16.mxu1 %vm2225_vm6, %v2224_v9 }
 0x28a   :  { %2004 = vmatpush3.bf16.msra.mxu0 %v1280_v52  ;;  %2005 = vmatprep.mubr.msk.bf16.mxu0 %vm2225_vm6, %v2224_v9 }
 0x28b   :  { %2015 = vmatprep.subr.bf16.mxu0 %v2224_v9 }
 0x2c1   :  { %v788_v54 = vpop.f32.mrf.mxu1 }
 0x2c2   :  { %v741_v55 = vpop.f32.mrf.mxu0  ;;  %v2592_v60 = vmul.f32 0.35355338, %v788_v54 }
 0x2c3   :  { %v2590_v59 = vmul.f32 0.35355338, %v741_v55  ;;  %v1965_v20 = vpop.f32.mrf.mxu1 }
 0x2c4   :  { %v1959_v32 = vpop.f32.mrf.mxu0  ;;  %v1100_v63 = vsel %vm1093_vm12, %v2592_v60, -inf }
 0x2c5   :  { %v791_v61 = vpop.f32.mrf.mxu1  ;;  %v1094_v26 = vsel %vm1093_vm12, %v2590_v59, -inf }
 0x2c6   :  { %1095 = vmax.xlane.f32.xlu0 %v1094_v26  ;;  %v744_v38 = vpop.f32.mrf.mxu0  ;;  %v2598_v37 = vmul.f32 0.35355338, %v791_v61 }
 0x2c7   :  { %v2596_v62 = vmul.f32 0.35355338, %v744_v38  ;;  %v1966_v40 = vpop.f32.mrf.mxu1 }
 0x2c8   :  { %v1960_v41 = vpop.f32.mrf.mxu0  ;;  %v1103_v34 = vsel %vm1093_vm12, %v2598_v37, -inf }
 0x2c9   :  { %v1097_v0 = vsel %vm1093_vm12, %v2596_v62, -inf }
 0x2ca   :  { %1101 = vmax.xlane.f32.xlu0 %v1100_v63  ;;  %1098 = vmax.xlane.f32.xlu1 %v1097_v0 }
 0x2ce   :  { %1104 = vmax.xlane.f32.xlu0 %v1103_v34 }
 0x338   :  { %v835_v36 = vpop.f32.mrf.mxu0  ;;  %v882_v10 = vpop.f32.mrf.mxu1 }
 0x339   :  { %v2606_v58 = vmul.f32 0.35355338, %v835_v36  ;;  %v2608_v53 = vmul.f32 0.35355338, %v882_v10 }
 0x33a   :  { %v1971_v48 = vpop.f32.mrf.mxu0  ;;  %v1977_v46 = vpop.f32.mrf.mxu1 }
 0x33b   :  { %v1106_v13 = vsel %vm1093_vm12, %v2606_v58, -inf  ;;  %v1112_v22 = vsel %vm1093_vm12, %v2608_v53, -inf }
 0x33c   :  { %v885_v14 = vpop.f32.mrf.mxu1  ;;  %1107 = vmax.xlane.f32.xlu1 %v1106_v13  ;;  %v838_v15 = vpop.f32.mrf.mxu0 }
 0x33d   :  { %v2612_v16 = vmul.f32 0.35355338, %v838_v15  ;;  %v2614_v21 = vmul.f32 0.35355338, %v885_v14 }
 0x33e   :  { %v1972_v17 = vpop.f32.mrf.mxu0  ;;  %v1978_v18 = vpop.f32.mrf.mxu1 }
 0x33f   :  { %v1109_v7 = vsel %vm1093_vm12, %v2612_v16, -inf  ;;  %v1115_v47 = vsel %vm1093_vm12, %v2614_v21, -inf }
 0x340   :  { %v976_v27 = vpop.f32.mrf.mxu1  ;;  %1113 = vmax.xlane.f32.xlu1 %v1112_v22  ;;  %1110 = vmax.xlane.f32.xlu0 %v1109_v7 }
 0x341   :  { %v929_v29 = vpop.f32.mrf.mxu0  ;;  %v2622_v45 = vmul.f32 0.35355338, %v976_v27 }
 0x342   :  { %v2620_v4 = vmul.f32 0.35355338, %v929_v29  ;;  %v1989_v44 = vpop.f32.mrf.mxu1 }
 0x343   :  { %v1983_v3 = vpop.f32.mrf.mxu0  ;;  %v1124_v54 = vsel %vm1093_vm12, %v2622_v45, -inf }
 0x344   :  { %v1118_v49 = vsel %vm1093_vm12, %v2620_v4, -inf  ;;  %v979_v50 = vpop.f32.mrf.mxu1  ;;  %1116 = vmax.xlane.f32.xlu0 %v1115_v47 }
 0x345   :  { %1119 = vmax.xlane.f32.xlu1 %v1118_v49  ;;  %v932_v31 = vpop.f32.mrf.mxu0  ;;  %v2630_v52 = vmul.f32 0.35355338, %v979_v50 }
 0x346   :  { %v2628_v25 = vmul.f32 0.35355338, %v932_v31  ;;  %v1990_v51 = vpop.f32.mrf.mxu1 }
 0x347   :  { %v1984_v43 = vpop.f32.mrf.mxu0  ;;  %v1127_v41 = vsel %vm1093_vm12, %v2630_v52, -inf }
 0x348   :  { %v1121_v55 = vsel %vm1093_vm12, %v2628_v25, -inf  ;;  %v1070_v20 = vpop.f32.mrf.mxu1 }
 0x349   :  { %1125 = vmax.xlane.f32.xlu1 %v1124_v54  ;;  %1122 = vmax.xlane.f32.xlu0 %v1121_v55  ;;  %v1023_v32 = vpop.f32.mrf.mxu0  ;;  %v2638_v40 = vmul.f32 0.35355338, %v1070_v20 }
 0x34a   :  { %v2636_v61 = vmul.f32 0.35355338, %v1023_v32  ;;  %v2001_v38 = vpop.f32.mrf.mxu1 }
 0x34b   :  { %v1995_v26 = vpop.f32.mrf.mxu0  ;;  %v1136_v13 = vsel %vm1093_vm12, %v2638_v40, -inf }
 0x34c   :  { %v1130_v63 = vsel %vm1093_vm12, %v2636_v61, -inf  ;;  %v1073_v0 = vpop.f32.mrf.mxu1 }
 0x34d   :  { %1128 = vmax.xlane.f32.xlu0 %v1127_v41  ;;  %1131 = vmax.xlane.f32.xlu1 %v1130_v63  ;;  %v1026_v34 = vpop.f32.mrf.mxu0  ;;  %v2646_v48 = vmul.f32 0.35355338, %v1073_v0 }
 0x34e   :  { %v2644_v36 = vmul.f32 0.35355338, %v1026_v34  ;;  %v2002_v10 = vpop.f32.mrf.mxu1 }
 0x34f   :  { %v1996_v46 = vpop.f32.mrf.mxu0  ;;  %v1139_v15 = vsel %vm1093_vm12, %v2646_v48, -inf  ;;  %v1096_v17 = vpop.xlane.xlu0 %1095 }
 0x350   :  { %v1133_v14 = vsel %vm1093_vm12, %v2644_v36, -inf  ;;  %v1142_v7 = vsub.f32 %v2590_v59, %v1096_v17 }
 0x351   :  { %1137 = vmax.xlane.f32.xlu1 %v1136_v13  ;;  %1134 = vmax.xlane.f32.xlu0 %v1133_v14 }
 0x352   :  { %v1158_v29 = vmul.f32 1.442695, %v1142_v7 }
 0x353   :  { %v1102_v18 = vpop.xlane.xlu0 %1101  ;;  %v1099_v22 = vpop.xlane.xlu1 %1098 }
 0x354   :  { %v1143_v27 = vsub.f32 %v2596_v62, %v1099_v22  ;;  %2133 = vpow2.f32 %v1158_v29 }
 0x355   :  { %1140 = vmax.xlane.f32.xlu0 %v1139_v15 }
 0x356   :  { %v1160_v3 = vmul.f32 1.442695, %v1143_v27 }
 0x358   :  { %2135 = vpow2.f32 %v1160_v3 }
 0x362   :  { %1375 = vrot.lane.b32.xlu1 %v2543_v57, %s2222_s14  ;;  %v1105_v57 = vpop.xlane.xlu0 %1104 }
 0x363   :  { %v1145_v44 = vsub.f32 %v2598_v37, %v1105_v57 }
 0x366   :  { %1423 = vrot.lane.b32.xlu1 %v2541_v56, %s2222_s14  ;;  %v1144_v56 = vsub.f32 %v2592_v60, %v1102_v18 }
 0x36a   :  { %1519 = vrot.lane.b32.xlu1 %v2551_v30, %s2222_s14  ;;  %v1162_v30 = vmul.f32 1.442695, %v1144_v56 }
 0x36b   :  { %1327 = vrot.lane.b32.xlu0 %v2519_v8, %s2222_s14  ;;  %v1164_v8 = vmul.f32 1.442695, %v1145_v44 }
 0x36c   :  { %2137 = vpow2.f32 %v1162_v30 }
 0x36d   :  { %2139 = vpow2.f32 %v1164_v8 }
 0x36f   :  { %1471 = vrot.lane.b32.xlu0 %v2553_v11, %s2222_s14  ;;  %v2668_v11 = vpop.eup %2133 }
 0x370   :  { %v2670_v47 = vpop.eup %2135  ;;  %v1190_v62 = vsel %vm1093_vm12, %v2668_v11, 0.0 }
 0x371   :  { %v1193_v60 = vsel %vm1093_vm12, %v2670_v47, 0.0 }
 0x379   :  { %v2672_v59 = vpop.eup %2137 }
 0x37a   :  { %v2678_v49 = vpop.eup %2139  ;;  %v1196_v37 = vsel %vm1093_vm12, %v2672_v59, 0.0 }
 0x37b   :  { %v1199_v50 = vsel %vm1093_vm12, %v2678_v49, 0.0 }
 0x38e   :  { %1191 = vadd.xlane.f32.xlu1 %v1190_v62  ;;  %1194 = vadd.xlane.f32.xlu0 %v1193_v60 }
 0x392   :  { %1197 = vadd.xlane.f32.xlu1 %v1196_v37  ;;  %1200 = vadd.xlane.f32.xlu0 %v1199_v50 }
 0x3c5   :  { %v1108_v31 = vpop.xlane.xlu1 %1107 }
 0x3c6   :  { %v1146_v43 = vsub.f32 %v2606_v58, %v1108_v31 }
 0x3c8   :  { %v1166_v51 = vmul.f32 1.442695, %v1146_v43 }
 0x3c9   :  { %v1114_v54 = vpop.xlane.xlu1 %1113  ;;  %v1111_v55 = vpop.xlane.xlu0 %1110 }
 0x3ca   :  { %2141 = vpow2.f32 %v1166_v51  ;;  %v1148_v20 = vsub.f32 %v2608_v53, %v1114_v54  ;;  %v1147_v32 = vsub.f32 %v2612_v16, %v1111_v55 }
 0x3cc   :  { %v1170_v26 = vmul.f32 1.442695, %v1148_v20  ;;  %v1168_v38 = vmul.f32 1.442695, %v1147_v32 }
 0x3cd   :  { %v1117_v41 = vpop.xlane.xlu0 %1116 }
 0x3ce   :  { %v1120_v63 = vpop.xlane.xlu1 %1119  ;;  %2143 = vpow2.f32 %v1170_v26  ;;  %v1149_v0 = vsub.f32 %v2614_v21, %v1117_v41 }
 0x3cf   :  { %v1150_v34 = vsub.f32 %v2620_v4, %v1120_v63  ;;  %2145 = vpow2.f32 %v1168_v38 }
 0x3d0   :  { %v1172_v10 = vmul.f32 1.442695, %v1149_v0 }
 0x3d1   :  { %v1174_v58 = vmul.f32 1.442695, %v1150_v34 }
 0x3d2   :  { %v1126_v46 = vpop.xlane.xlu1 %1125  ;;  %v1123_v13 = vpop.xlane.xlu0 %1122  ;;  %2147 = vpow2.f32 %v1172_v10 }
 0x3d3   :  { %v1152_v14 = vsub.f32 %v2622_v45, %v1126_v46  ;;  %v1151_v53 = vsub.f32 %v2628_v25, %v1123_v13  ;;  %2149 = vpow2.f32 %v1174_v58 }
 0x3d5   :  { %v1178_v16 = vmul.f32 1.442695, %v1152_v14  ;;  %v1176_v15 = vmul.f32 1.442695, %v1151_v53 }
 0x3d6   :  { %v1129_v17 = vpop.xlane.xlu0 %1128  ;;  %v1132_v18 = vpop.xlane.xlu1 %1131 }
 0x3d7   :  { %2151 = vpow2.f32 %v1178_v16  ;;  %v1153_v21 = vsub.f32 %v2630_v52, %v1129_v17  ;;  %v1154_v4 = vsub.f32 %v2636_v61, %v1132_v18  ;;  %v2693_v22 = vpop.eup %2141 }
 0x3d8   :  { %2153 = vpow2.f32 %v1176_v15  ;;  %v1202_v45 = vsel %vm1093_vm12, %v2693_v22, 0.0 }
 0x3d9   :  { %v1180_v7 = vmul.f32 1.442695, %v1153_v21  ;;  %v1182_v27 = vmul.f32 1.442695, %v1154_v4  ;;  %1203 = vadd.xlane.f32.xlu1 %v1202_v45 }
 0x3da   :  { %v1138_v25 = vpop.xlane.xlu1 %1137  ;;  %v1135_v57 = vpop.xlane.xlu0 %1134 }
 0x3db   :  { %2155 = vpow2.f32 %v1180_v7  ;;  %v1156_v29 = vsub.f32 %v2638_v40, %v1138_v25  ;;  %v1155_v56 = vsub.f32 %v2644_v36, %v1135_v57  ;;  %v2699_v3 = vpop.eup %2143 }
 0x3dc   :  { %2157 = vpow2.f32 %v1182_v27  ;;  %v2701_v52 = vpop.eup %2145  ;;  %v1208_v30 = vsel %vm1093_vm12, %v2699_v3, 0.0 }
 0x3dd   :  { %v1186_v61 = vmul.f32 1.442695, %v1156_v29  ;;  %v1184_v44 = vmul.f32 1.442695, %v1155_v56  ;;  %1209 = vadd.xlane.f32.xlu1 %v1208_v30  ;;  %v1205_v8 = vsel %vm1093_vm12, %v2701_v52, 0.0 }
 0x3de   :  { %v1141_v62 = vpop.xlane.xlu0 %1140  ;;  %1206 = vadd.xlane.f32.xlu0 %v1205_v8  ;;  %v1376_v46 = vpop.permute.xlu1 %1375 }
 0x3df   :  { %2159 = vpow2.f32 %v1186_v61  ;;  %v1157_v40 = vsub.f32 %v2646_v48, %v1141_v62  ;;  %v2708_v36 = vpop.eup %2147 }
 0x3e0   :  { %2161 = vpow2.f32 %v1184_v44  ;;  %v2710_v60 = vpop.eup %2149  ;;  %v1211_v50 = vsel %vm1093_vm12, %v2708_v36, 0.0 }
 0x3e1   :  { %v1188_v37 = vmul.f32 1.442695, %v1157_v40  ;;  %v1214_v31 = vsel %vm1093_vm12, %v2710_v60, 0.0 }
 0x3e2   :  { %v1328_v43 = vpop.permute.xlu0 %1327  ;;  %1215 = vadd.xlane.f32.xlu1 %v1214_v31  ;;  %1212 = vadd.xlane.f32.xlu0 %v1211_v50  ;;  %v1424_v13 = vpop.permute.xlu1 %1423 }
 0x3e3   :  { %2163 = vpow2.f32 %v1188_v37  ;;  %2010 = vmatpush3.bf16.msra.mxu1 %v1328_v43 }
 0x3e4   :  { %v2716_v51 = vpop.eup %2151  ;;  %2021 = vmatprep.subr.bf16.mxu1 %v2224_v9 }
 0x3e5   :  { %v2718_v48 = vpop.eup %2153  ;;  %v1220_v54 = vsel %vm1093_vm12, %v2716_v51, 0.0 }
 0x3e6   :  { %v1217_v55 = vsel %vm1093_vm12, %v2718_v48, 0.0  ;;  %1221 = vadd.xlane.f32.xlu1 %v1220_v54  ;;  %v2749_v14 = vpop.permute.xlu1 %1519  ;;  %v1472_v53 = vpop.permute.xlu0 %1471 }
 0x3e7   :  { %1218 = vadd.xlane.f32.xlu0 %v1217_v55 }
 0x3e8   :  { %v2725_v20 = vpop.eup %2155 }
 0x3e9   :  { %v2727_v32 = vpop.eup %2157  ;;  %v1223_v26 = vsel %vm1093_vm12, %v2725_v20, 0.0 }
 0x3ea   :  { %v1226_v38 = vsel %vm1093_vm12, %v2727_v32, 0.0 }
 0x3eb   :  { %1227 = vadd.xlane.f32.xlu1 %v1226_v38  ;;  %1224 = vadd.xlane.f32.xlu0 %v1223_v26 }
 0x3ec   :  { %v2733_v41 = vpop.eup %2159 }
 0x3ed   :  { %v2735_v63 = vpop.eup %2161  ;;  %v1232_v0 = vsel %vm1093_vm12, %v2733_v41, 0.0 }
 0x3ee   :  { %v1229_v34 = vsel %vm1093_vm12, %v2735_v63, 0.0 }
 0x3ef   :  { %1233 = vadd.xlane.f32.xlu1 %v1232_v0  ;;  %1230 = vadd.xlane.f32.xlu0 %v1229_v34 }
 0x3f0   :  { %v2741_v10 = vpop.eup %2163 }
 0x3f1   :  { %v1235_v58 = vsel %vm1093_vm12, %v2741_v10, 0.0 }
 0x3f3   :  { %1236 = vadd.xlane.f32.xlu0 %v1235_v58 }
 0x400   :  { %1615 = vrot.lane.b32.xlu1 %v2567_v28, %s2222_s14 }
 0x409   :  { %1567 = vrot.lane.b32.xlu0 %v2569_v19, %s2222_s14 }
 0x417   :  { %v1192_v16 = vpop.xlane.xlu1 %1191  ;;  %v1195_v15 = vpop.xlane.xlu0 %1194 }
 0x418   :  { %2165 = vrcp.f32 %v1192_v16 }
 0x419   :  { %2167 = vrcp.f32 %v1195_v15 }
 0x41b   :  { %v1198_v17 = vpop.xlane.xlu1 %1197  ;;  %v1201_v18 = vpop.xlane.xlu0 %1200 }
 0x41c   :  { %2169 = vrcp.f32 %v1198_v17 }
 0x41d   :  { %2171 = vrcp.f32 %v1201_v18 }
 0x425   :  { %v2166_v21 = vpop.eup %2165 }
 0x426   :  { %v2168_v4 = vpop.eup %2167  ;;  %v1254_v28 = vmul.f32 %v2166_v21, %v2668_v11 }
 0x427   :  { %v1255_v7 = vmul.f32 %v2168_v4, %v2670_v47 }
 0x429   :  { %v2170_v27 = vpop.eup %2169  ;;  %v1270_v19 = vpack.c.bf16 %v1255_v7, %v1254_v28 }
 0x42a   :  { %v2172_v45 = vpop.eup %2171  ;;  %v1256_v25 = vmul.f32 %v2170_v27, %v2672_v59 }
 0x42b   :  { %2006 = vmatmul.mubr.msk.bf16.vlgmr.msra.gmra.mxu0 %vm1093_vm12, %v1270_v19  ;;  %v1257_v57 = vmul.f32 %v2172_v45, %v2678_v49 }
 0x42c   :  { %2016 = vmatpush3.bf16.msra.mxu0 %v1376_v46  ;;  %2017 = vmatprep.mubr.msk.bf16.mxu0 %vm2225_vm6, %v2224_v9 }
 0x42d   :  { %v1271_v29 = vpack.c.bf16 %v1257_v57, %v1256_v25  ;;  %2027 = vmatprep.subr.bf16.mxu0 %v2224_v9 }
 0x42f   :  { %2012 = vmatmul.mubr.msk.bf16.vlgmr.msra.gmra.mxu1 %vm1093_vm12, %v1271_v29 }
 0x430   :  { %2022 = vmatpush3.bf16.msra.mxu1 %v1424_v13  ;;  %2023 = vmatprep.mubr.msk.bf16.mxu1 %vm2225_vm6, %v2224_v9 }
 0x431   :  { %2033 = vmatprep.subr.bf16.mxu1 %v2224_v9 }
 0x462   :  { %v1204_v11 = vpop.xlane.xlu1 %1203 }
 0x463   :  { %2173 = vrcp.f32 %v1204_v11 }
 0x466   :  { %v1210_v47 = vpop.xlane.xlu1 %1209 }
 0x467   :  { %v1207_v59 = vpop.xlane.xlu0 %1206 }
 0x468   :  { %2175 = vrcp.f32 %v1207_v59 }
 0x469   :  { %2177 = vrcp.f32 %v1210_v47 }
 0x46b   :  { %v1216_v49 = vpop.xlane.xlu1 %1215  ;;  %v1213_v56 = vpop.xlane.xlu0 %1212 }
 0x46c   :  { %2179 = vrcp.f32 %v1213_v56 }
 0x46d   :  { %2181 = vrcp.f32 %v1216_v49 }
 0x46f   :  { %v1222_v61 = vpop.xlane.xlu1 %1221 }
 0x470   :  { %v1219_v44 = vpop.xlane.xlu0 %1218  ;;  %v2174_v30 = vpop.eup %2173 }
 0x471   :  { %2183 = vrcp.f32 %v1219_v44  ;;  %v1258_v37 = vmul.f32 %v2174_v30, %v2693_v22 }
 0x472   :  { %2185 = vrcp.f32 %v1222_v61 }
 0x474   :  { %v1228_v8 = vpop.xlane.xlu1 %1227  ;;  %v1225_v62 = vpop.xlane.xlu0 %1224 }
 0x475   :  { %v2176_v40 = vpop.eup %2175  ;;  %2187 = vrcp.f32 %v1225_v62 }
 0x476   :  { %v1259_v50 = vmul.f32 %v2176_v40, %v2701_v52  ;;  %2189 = vrcp.f32 %v1228_v8  ;;  %v2178_v54 = vpop.eup %2177 }
 0x477   :  { %v1260_v0 = vmul.f32 %v2178_v54, %v2699_v3 }
 0x478   :  { %v1234_v31 = vpop.xlane.xlu1 %1233  ;;  %v1231_v43 = vpop.xlane.xlu0 %1230  ;;  %v1272_v55 = vpack.c.bf16 %v1259_v50, %v1258_v37 }
 0x479   :  { %2191 = vrcp.f32 %v1231_v43  ;;  %v2180_v26 = vpop.eup %2179 }
 0x47a   :  { %2193 = vrcp.f32 %v1234_v31  ;;  %2018 = vmatmul.mubr.msk.bf16.vlgmr.msra.gmra.mxu0 %vm1093_vm12, %v1272_v55  ;;  %v1261_v34 = vmul.f32 %v2180_v26, %v2708_v36  ;;  %v2182_v22 = vpop.eup %2181 }
 0x47b   :  { %2028 = vmatpush3.bf16.msra.mxu0 %v1472_v53  ;;  %2029 = vmatprep.mubr.msk.bf16.mxu0 %vm2225_vm6, %v2224_v9  ;;  %v1262_v46 = vmul.f32 %v2182_v22, %v2710_v60  ;;  %v1874_v22 = vld.sshfl [vmem:[%s2907_s4 + $0x6] sm:$0x11 pattern:$0x75316420]  ;;  %s2232_s4 = smov 64  }
 0x47c   :  { %v1237_v38 = vpop.xlane.xlu0 %1236  ;;  %2039 = vmatprep.subr.bf16.mxu0 %v2224_v9  ;;  %v1273_v52 = vpack.c.bf16 %v1261_v34, %v1260_v0  ;;  %v1616_v21 = vpop.permute.xlu1 %1615 }
 0x47d   :  { %2195 = vrcp.f32 %v1237_v38 }
 0x47e   :  { %v2184_v58 = vpop.eup %2183  ;;  %2024 = vmatmul.mubr.msk.bf16.vlgmr.msra.gmra.mxu1 %vm1093_vm12, %v1273_v52 }
 0x47f   :  { %v1263_v13 = vmul.f32 %v2184_v58, %v2718_v48  ;;  %v2186_v53 = vpop.eup %2185  ;;  %2034 = vmatpush3.bf16.msra.mxu1 %v2749_v14  ;;  %2035 = vmatprep.mubr.msk.bf16.mxu1 %vm2225_vm6, %v2224_v9  ;;  %v122_v58 = vrot.slane %v1874_v22, %v2317_v23 }
 0x480   :  { %2045 = vmatprep.subr.bf16.mxu1 %v2224_v9  ;;  %v1568_v16 = vpop.permute.xlu0 %1567  ;;  %v1264_v15 = vmul.f32 %v2186_v53, %v2716_v51 }
 0x481   :  { %v1274_v3 = vpack.c.bf16 %v1263_v13, %v1262_v46  ;;  %v115_v46 = vcombine.high %v1874_v22, %v1874_v22  ;;  %v2815_v53 = vrot.slane %v122_v58, %v2301_v12 }
 0x482   :  { %v2188_v36 = vpop.eup %2187 }
 0x483   :  { %2030 = vmatmul.mubr.msk.bf16.vlgmr.msra.gmra.mxu0 %vm1093_vm12, %v1274_v3  ;;  %v1265_v17 = vmul.f32 %v2188_v36, %v2725_v20  ;;  %v2190_v60 = vpop.eup %2189  ;;  %v129_v3 = vrot.slane %v115_v46, %v2317_v23 }
 0x484   :  { %2040 = vmatpush3.bf16.msra.mxu0 %v1568_v16  ;;  %2041 = vmatprep.mubr.msk.bf16.mxu0 %vm2225_vm6, %v2224_v9  ;;  %v1266_v4 = vmul.f32 %v2190_v60, %v2727_v32 }
 0x485   :  { %v1275_v48 = vpack.c.bf16 %v1265_v17, %v1264_v15  ;;  %v2823_v36 = vrot.slane %v129_v3, %v2301_v12 }
 0x486   :  { %v2192_v14 = vpop.eup %2191 }
 0x487   :  { %v2194_v18 = vpop.eup %2193  ;;  %2036 = vmatmul.mubr.msk.bf16.vlgmr.msra.gmra.mxu1 %vm1093_vm12, %v1275_v48  ;;  %v1267_v28 = vmul.f32 %v2192_v14, %v2735_v63 }
 0x488   :  { %2046 = vmatpush3.bf16.msra.mxu1 %v1616_v21  ;;  %2047 = vmatprep.mubr.msk.bf16.mxu1 %vm2225_vm6, %v2224_v9  ;;  %v1268_v7 = vmul.f32 %v2194_v18, %v2733_v41 }
 0x489   :  { %v1276_v20 = vpack.c.bf16 %v1267_v28, %v1266_v4 }
 0x48a   :  { %v2196_v51 = vpop.eup %2195 }
 0x48b   :  { %v1269_v27 = vmul.f32 %v2196_v51, %v2741_v10  ;;  %2042 = vmatmul.mubr.msk.bf16.vlgmr.msra.gmra.mxu0 %vm1093_vm12, %v1276_v20 }
 0x48d   :  { %v1277_v19 = vpack.c.bf16 %v1269_v27, %v1268_v7 }
 0x48f   :  { %2048 = vmatmul.mubr.msk.bf16.vlgmr.msra.gmra.mxu1 %vm1093_vm12, %v1277_v19 }
 0x4eb   :  { %v2792_v45 = vpop.f32.mrf.mxu0 }
 0x4ed   :  { %v2007_v32 = vpop.f32.mrf.mxu0 }
 0x4ef   :  { %v2794_v25 = vpop.f32.mrf.mxu0  ;;  %v2796_v63 = vpop.f32.mrf.mxu1 }
 0x4f1   :  { %v2008_v57 = vpop.f32.mrf.mxu0  ;;  %v2013_v9 = vpop.f32.mrf.mxu1 }
 0x4f3   :  { %v2798_v29 = vpop.f32.mrf.mxu1 }
 0x4f5   :  { %v2014_v11 = vpop.f32.mrf.mxu1 }
 0x53a   :  { %v1415_v41 = vpop.f32.mrf.mxu0 }
 0x53b   :  { %1666 = vrot.lane.b32.xlu0 %v1415_v41, %s2229_s29 }
 0x53c   :  { %v2019_v10 = vpop.f32.mrf.mxu0 }
 0x53e   :  { %v1418_v47 = vpop.f32.mrf.mxu0  ;;  %v1463_v59 = vpop.f32.mrf.mxu1 }
 0x53f   :  { %1668 = vrot.lane.b32.xlu1 %v1418_v47, %s2229_s29  ;;  %1670 = vrot.lane.b32.xlu0 %v1463_v59, %s2229_s29 }
 0x540   :  { %v2020_v49 = vpop.f32.mrf.mxu0  ;;  %v2025_v56 = vpop.f32.mrf.mxu1 }
 0x542   :  { %v1466_v61 = vpop.f32.mrf.mxu1 }
 0x543   :  { %v1511_v44 = vpop.f32.mrf.mxu0  ;;  %1672 = vrot.lane.b32.xlu1 %v1466_v61, %s2229_s29 }
 0x544   :  { %1682 = vrot.lane.b32.xlu0 %v1511_v44, %s2230_s30  ;;  %v2026_v30 = vpop.f32.mrf.mxu1 }
 0x545   :  { %v2031_v8 = vpop.f32.mrf.mxu0 }
 0x547   :  { %v1514_v62 = vpop.f32.mrf.mxu0  ;;  %v1559_v40 = vpop.f32.mrf.mxu1 }
 0x548   :  { %1686 = vrot.lane.b32.xlu0 %v1559_v40, %s2230_s30  ;;  %1684 = vrot.lane.b32.xlu1 %v1514_v62, %s2230_s30 }
 0x549   :  { %v2032_v37 = vpop.f32.mrf.mxu0  ;;  %v2037_v50 = vpop.f32.mrf.mxu1 }
 0x54b   :  { %v1562_v31 = vpop.f32.mrf.mxu1  ;;  %v1607_v43 = vpop.f32.mrf.mxu0 }
 0x54c   :  { %1688 = vrot.lane.b32.xlu1 %v1562_v31, %s2230_s30  ;;  %1698 = vrot.lane.b32.xlu0 %v1607_v43, %s2231_s3 }
 0x54d   :  { %v2038_v54 = vpop.f32.mrf.mxu1  ;;  %v2043_v55 = vpop.f32.mrf.mxu0 }
 0x54f   :  { %v1610_v26 = vpop.f32.mrf.mxu0  ;;  %v1655_v38 = vpop.f32.mrf.mxu1 }
 0x550   :  { %1702 = vrot.lane.b32.xlu0 %v1655_v38, %s2231_s3  ;;  %1700 = vrot.lane.b32.xlu1 %v1610_v26, %s2231_s3 }
 0x551   :  { %v2044_v0 = vpop.f32.mrf.mxu0  ;;  %v2049_v34 = vpop.f32.mrf.mxu1 }
 0x553   :  { %v1658_v52 = vpop.f32.mrf.mxu1 }
 0x554   :  { %574 = vrot.lane.b32.xlu0 %v2507_v39, %s2222_s14  ;;  %1704 = vrot.lane.b32.xlu1 %v1658_v52, %s2231_s3 }
 0x555   :  { %v2050_v13 = vpop.f32.mrf.mxu1 }
 0x558   :  { %578 = vrot.lane.b32.xlu0 %v2503_v33, %s2222_s14  ;;  %576 = vrot.lane.b32.xlu1 %v2509_v42, %s2222_s14 }
 0x55c   :  { %598 = vrot.lane.b32.xlu0 %v2815_v53, %s2232_s4  ;;  %580 = vrot.lane.b32.xlu1 %v2505_v35, %s2222_s14 }
 0x560   :  { %600 = vrot.lane.b32.xlu1 %v2823_v36, %s2232_s4  ;;  %1780 = vrot.lane.b32.xlu0 %v2319_v24, %s2222_s14 }
 0x5ad   :  { %v1667_v16 = vpop.permute.xlu0 %1666 }
 0x5ae   :  { %v1710_v12 = vsel %vm700_vm11, %v2792_v45, %v1667_v16 }
 0x5b1   :  { %v1669_v15 = vpop.permute.xlu1 %1668  ;;  %v1671_v17 = vpop.permute.xlu0 %1670 }
 0x5b2   :  { %v1712_v28 = vsel %vm700_vm11, %v2796_v63, %v1671_v17  ;;  %v1711_v51 = vsel %vm700_vm11, %v2794_v25, %v1669_v15 }
 0x5b5   :  { %v1673_v23 = vpop.permute.xlu1 %1672 }
 0x5b6   :  { %v1683_v60 = vpop.permute.xlu0 %1682  ;;  %v1713_v25 = vsel %vm700_vm11, %v2798_v29, %v1673_v23 }
 0x5b7   :  { %v1714_v4 = vsel %vm1093_vm12, %v1710_v12, %v1683_v60 }
 0x5ba   :  { %v1687_v48 = vpop.permute.xlu0 %1686  ;;  %v1685_v14 = vpop.permute.xlu1 %1684 }
 0x5bb   :  { %v1716_v7 = vsel %vm1093_vm12, %v1712_v28, %v1687_v48  ;;  %v1715_v27 = vsel %vm1093_vm12, %v1711_v51, %v1685_v14 }
 0x5be   :  { %v1689_v18 = vpop.permute.xlu1 %1688  ;;  %v1699_v21 = vpop.permute.xlu0 %1698 }
 0x5bf   :  { %v2837_v20 = vsel %vm1718_vm13, %v1714_v4, %v1699_v21  ;;  %v1717_v41 = vsel %vm1093_vm12, %v1713_v25, %v1689_v18  ;;  %v566_v25 = vadd.f32 %v2507_v39, %v2475_v5 }
 0x5c0   :  { %v1739_v9 = vmul.f32 %v2837_v20, %v2837_v20  ;;  %v1723_v10 = vsel %vm150_vm0, %v2837_v20, 0.0 }
 0x5c2   :  { %v1703_v19 = vpop.permute.xlu0 %1702  ;;  %v1701_v32 = vpop.permute.xlu1 %1700  ;;  %v1743_v44 = vsel %vm150_vm0, %v1739_v9, 0.0 }
 0x5c3   :  { %v1721_v57 = vsel %vm1718_vm13, %v1716_v7, %v1703_v19  ;;  %v1720_v45 = vsel %vm1718_vm13, %v1715_v27, %v1701_v32 }
 0x5c4   :  { %v1724_v63 = vsel %vm150_vm0, %v1721_v57, 0.0  ;;  %v1741_v11 = vmul.f32 %v1721_v57, %v1721_v57  ;;  %v1740_v59 = vmul.f32 %v1720_v45, %v1720_v45  ;;  %v1726_v30 = vsel %vm150_vm0, %v1720_v45, 0.0 }
 0x5c5   :  { %v1725_v56 = vadd.f32 %v1724_v63, %v1723_v10 }
 0x5c6   :  { %v1744_v47 = vsel %vm150_vm0, %v1741_v11, 0.0  ;;  %v1705_v49 = vpop.permute.xlu1 %1704  ;;  %v1746_v37 = vsel %vm150_vm0, %v1740_v59, 0.0  ;;  %v575_v4 = vpop.permute.xlu0 %574 }
 0x5c7   :  { %v1722_v61 = vsel %vm1718_vm13, %v1717_v41, %v1705_v49  ;;  %v1745_v29 = vadd.f32 %v1744_v47, %v1743_v44  ;;  %v1729_v31 = vsel %vm150_vm0, %v1725_v56, 0.0  ;;  %v567_v41 = vadd.f32 %v2509_v42, %v2477_v6 }
 0x5c8   :  { %v1727_v8 = vsel %vm150_vm0, %v1722_v61, 0.0  ;;  %v1742_v62 = vmul.f32 %v1722_v61, %v1722_v61  ;;  %v586_v56 = vadd.f32 %v575_v4, %v566_v25  ;;  %v568_v44 = vadd.f32 %v2503_v33, %v2471_v1 }
 0x5c9   :  { %v1728_v40 = vadd.f32 %v1727_v8, %v1726_v30  ;;  %v1749_v26 = vsel %vm150_vm0, %v1745_v29, 0.0 }
 0x5ca   :  { %v1747_v50 = vsel %vm150_vm0, %v1742_v62, 0.0  ;;  %v579_v28 = vpop.permute.xlu0 %578  ;;  %v577_v51 = vpop.permute.xlu1 %576 }
 0x5cb   :  { %v1730_v43 = vsel %vm150_vm0, %v1728_v40, 0.0  ;;  %v1748_v54 = vadd.f32 %v1747_v50, %v1746_v37  ;;  %v588_v42 = vadd.f32 %v579_v28, %v568_v44 }
 0x5cc   :  { %v1731_v55 = vadd.f32 %v1730_v43, %v1729_v31 }
 0x5cd   :  { %v1750_v38 = vsel %vm150_vm0, %v1748_v54, 0.0 }
 0x5ce   :  { %v1732_v0 = vrot.slane %v1731_v55, 4  ;;  %v1751_v34 = vadd.f32 %v1750_v38, %v1749_v26  ;;  %v599_v7 = vpop.permute.xlu0 %598  ;;  %v581_v27 = vpop.permute.xlu1 %580 }
 0x5cf   :  { %v604_v30 = vsub.f32 %v586_v56, %v599_v7 }
 0x5d0   :  { %v1733_v22 = vadd.f32 %v1732_v0, %v1731_v55  ;;  %v1752_v52 = vrot.slane %v1751_v34, 4 }
 0x5d2   :  { %v1734_v58 = vrot.slane %v1733_v22, 2  ;;  %v1753_v46 = vadd.f32 %v1752_v52, %v1751_v34  ;;  %v601_v29 = vpop.permute.xlu1 %600 }
 0x5d3   :  { %v606_v50 = vsub.f32 %v588_v42, %v601_v29 }
 0x5d4   :  { %v1735_v13 = vadd.f32 %v1734_v58, %v1733_v22  ;;  %v1754_v3 = vrot.slane %v1753_v46, 2 }
 0x5d6   :  { %v1736_v16 = vrot.slane %v1735_v13, 1  ;;  %v1755_v15 = vadd.f32 %v1754_v3, %v1753_v46 }
 0x5d8   :  { %v1737_v17 = vadd.f32 %v1736_v16, %v1735_v13  ;;  %v1756_v23 = vrot.slane %v1755_v15, 1 }
 0x5da   :  { %v1738_v60 = vmul.f32 0.03125, %v1737_v17  ;;  %v1757_v48 = vadd.f32 %v1756_v23, %v1755_v15 }
 0x5dc   :  { %v1758_v14 = vmul.f32 0.03125, %v1757_v48  ;;  %v1759_v18 = vmul.f32 %v1738_v60, %v1738_v60  ;;  %v1764_v19 = vsub.f32 %v1722_v61, %v1738_v60  ;;  %v1761_v32 = vsub.f32 %v2837_v20, %v1738_v60 }
 0x5dd   :  { %v1762_v9 = vsub.f32 %v1720_v45, %v1738_v60  ;;  %v1763_v63 = vsub.f32 %v1721_v57, %v1738_v60  ;;  %v587_v61 = vadd.f32 %v577_v51, %v567_v41  ;;  %v569_v20 = vadd.f32 %v2505_v35, %v2473_v2  ;;  %v1781_v57 = vpop.permute.xlu0 %1780 }
 0x5de   :  { %v1760_v21 = vsub.f32 %v1758_v14, %v1759_v18 }
 0x5df   :  { %v605_v8 = vsub.f32 %v587_v61, %v599_v7  ;;  %v589_v62 = vadd.f32 %v581_v27, %v569_v20 }
 0x5e0   :  { %v1765_v12 = vadd.f32 1e-05, %v1760_v21 }
 0x5e1   :  { %v607_v2 = vsub.f32 %v589_v62, %v601_v29 }
 0x5e2   :  { %2197 = vrsqrt.f32 %v1765_v12 }
 0x5ef   :  { %v2198_v11 = vpop.eup %2197 }
 0x5f0   :  { %v1770_v10 = vmul.f32 %v2198_v11, %v1764_v19  ;;  %v1767_v47 = vmul.f32 %v2198_v11, %v1761_v32  ;;  %v1768_v59 = vmul.f32 %v2198_v11, %v1762_v9  ;;  %v1769_v49 = vmul.f32 %v2198_v11, %v1763_v63 }
 0x5f2   :  { %v1775_v45 = vmul.f32 %v2319_v24, %v1767_v47  ;;  %v1776_v5 = vmul.f32 %v2319_v24, %v1768_v59  ;;  %v1777_v39 = vmul.f32 %v2319_v24, %v1769_v49  ;;  %v1778_v6 = vmul.f32 %v2319_v24, %v1770_v10 }
 0x5f4   :  { %v1783_v40 = vadd.f32 %v1781_v57, %v1775_v45  ;;  %v1784_v1 = vadd.f32 %v1781_v57, %v1776_v5  ;;  %v1785_v33 = vadd.f32 %v1781_v57, %v1777_v39  ;;  %v1786_v37 = vadd.f32 %v1781_v57, %v1778_v6 }
 0x5f6   :  { %v1788_v35 = vadd.f32 %v1784_v1, %v605_v8  ;;  %v1787_v31 = vadd.f32 %v1783_v40, %v604_v30  ;;  %v1790_v55 = vadd.f32 %v1786_v37, %v607_v2  ;;  %v1789_v26 = vadd.f32 %v1785_v33, %v606_v50 }
 0x5f8   :  { %v1794_v43 = vadd.f32 %v1788_v35, %v2815_v53  ;;  %v1793_v54 = vadd.f32 %v1787_v31, %v2815_v53  ;;  %v1796_v38 = vadd.f32 %v1790_v55, %v2823_v36  ;;  %v1795_v0 = vadd.f32 %v1789_v26, %v2823_v36 }
 0x5fa   :  { %1807 = vrot.lane.b32.xlu0 %v1794_v43, %s2232_s4  ;;  %1805 = vrot.lane.b32.xlu1 %v1793_v54, %s2232_s4  ;;  %vm1799_vm14 = vcmp.gt.f32.partialorder %v1795_v0, 0.0  ;;  %vm1800_vm15 = vcmp.gt.f32.partialorder %v1796_v38, 0.0  ;;  %vm1798_vm1 = vcmp.gt.f32.partialorder %v1794_v43, 0.0  ;;  %vm1797_vm2 = vcmp.gt.f32.partialorder %v1793_v54, 0.0 }
 0x5fe   :  { %1811 = vrot.lane.b32.xlu0 %v1796_v38, %s2232_s4  ;;  %1809 = vrot.lane.b32.xlu1 %v1795_v0, %s2232_s4 }
 0x66c   :  { %v1808_v34 = vpop.permute.xlu0 %1807  ;;  %v1806_v22 = vpop.permute.xlu1 %1805 }
 0x66d   :  { %v1818_v52 = vmul.f32 %v1808_v34, %v2319_v24  ;;  %v1817_v58 = vmul.f32 %v1806_v22, %v2319_v24 }
 0x66f   :  { %1827 = vrot.lane.b32.xlu0 %v1818_v52, %s2232_s4  ;;  %1825 = vrot.lane.b32.xlu1 %v1817_v58, %s2232_s4 }
 0x670   :  { %v1812_v46 = vpop.permute.xlu0 %1811  ;;  %v1810_v13 = vpop.permute.xlu1 %1809 }
 0x671   :  { %v1820_v3 = vmul.f32 %v1812_v46, %v2319_v24  ;;  %v1819_v16 = vmul.f32 %v1810_v13, %v2319_v24 }
 0x673   :  { %1831 = vrot.lane.b32.xlu0 %v1820_v3, %s2232_s4  ;;  %1829 = vrot.lane.b32.xlu1 %v1819_v16, %s2232_s4 }
 0x677   :  { %1843 = vrot.lane.b32.xlu0 %v2823_v36, %s2222_s14  ;;  %1841 = vrot.lane.b32.xlu1 %v2815_v53, %s2222_s14 }
 0x6e1   :  { %v1828_v15 = vpop.permute.xlu0 %1827  ;;  %v1826_v17 = vpop.permute.xlu1 %1825 }
 0x6e2   :  { %v1838_v18 = vsel %vm1798_vm1, %v1794_v43, %v1828_v15  ;;  %v1837_v12 = vsel %vm1797_vm2, %v1793_v54, %v1826_v17 }
 0x6e5   :  { %v1832_v23 = vpop.permute.xlu0 %1831  ;;  %v1830_v60 = vpop.permute.xlu1 %1829 }
 0x6e6   :  { %v1839_v48 = vsel %vm1799_vm14, %v1795_v0, %v1830_v60  ;;  %v1840_v14 = vsel %vm1800_vm15, %v1796_v38, %v1832_v23 }
 0x6e9   :  { %v1844_v24 = vpop.permute.xlu0 %1843  ;;  %v1842_v21 = vpop.permute.xlu1 %1841 }
 0x6ea   :  { %v1849_v36 = vadd.f32 %v1844_v24, %v1839_v48  ;;  %v1850_v4 = vadd.f32 %v1844_v24, %v1840_v14  ;;  %v1847_v28 = vadd.f32 %v1842_v21, %v1837_v12  ;;  %v1848_v53 = vadd.f32 %v1842_v21, %v1838_v18 }
 0x6ec   :  { %1853 = vst.msk [vmem:[#allocation2 + $0x10] sm:$0xff] %vm150_vm0, %v1849_v36  ;;  %1854 = vst.msk [vmem:[#allocation2 + $0x18] sm:$0xff] %vm150_vm0, %v1850_v4 }
 0x6ed   :  { %1851 = vst.msk [vmem:[#allocation2] sm:$0xff] %vm150_vm0, %v1847_v28  ;;  %1852 = vst.msk [vmem:[#allocation2 + $0x8] sm:$0xff] %vm150_vm0, %v1848_v53 }
 0x6ee   :  { %2210 = shalt.err (!%p2207_p4)
}
 0x6ef   :  { %s2234_s1 = smov 128  }
 0x6f0   :  { %1866 = dma.vmem_to_hbm [thread:$0]  %s1861_s10, 512, %s2909_s6, [#allocation3], %s2234_s1, %s2234_s1, %s2229_s29  }
 0x6f1   :  { %2219 = dma.done.wait [#allocation3], 512  }
 0x6f2   :  { %2220 = vsyncadd [#allocation3], 4294966784 }
 0x6f3   :  { %1870 = vsyncpa [#allocation3], 1 }

</bundles_post_ra>
